<compile_context>
chip_gen: v6e
topology: v6e:2x2x1
jax: 0.10.0
libtpu: 0.0.40
codegen_flags: <defaults>
</compile_context>

<pallas_src>
import math

import numpy as np
import jax
import jax.numpy as jnp
from jax import lax
from jax.experimental import pallas as pl
from jax.experimental.pallas import tpu as pltpu

# ----------------------------- "opt" configuration -----------------------------
L_2D = 4                                # opt.arch.posenc.L_2D
INPUT_2D_DIM = 2 + 4 * L_2D             # = 18
HIDDEN = 32
RAW_LAYERS = [None, HIDDEN, HIDDEN, 3]  # opt.arch.layers (util.get_layer_dims)
SKIP = (1,)                             # opt.arch.skip
BARF_C2F = (0.1, 0.5)                   # opt.barf_c2f
NE = 4 * L_2D                           # positional-encoding width (16)
TM_MAX = 2048                           # points (lanes) per kernel invocation


# --------------------------------- Pallas kernel --------------------------------
def nif_kernel(coord_ref, enc_const_ref, w0e_ref, w0cb_ref,
               w1f_ref, w1e_ref, w1cb_ref, w2_ref, b2_ref, out_ref):
    # Transposed layout: (features, TM) everywhere → lane-dense VPU/EUP/stores.
    x = coord_ref[0:1, :]                                  # (1, TM)
    y = coord_ref[1:2, :]                                  # (1, TM)
    tm = x.shape[1]

    consts = enc_const_ref[...]                            # (NE, 2) = [freq | phase]
    freq = consts[:, 0:1]                                  # (NE, 1)
    phase = consts[:, 1:2]                                 # (NE, 1)

    # enc row e: sin/cos(2^(e%L) * pi * coord); x rows 0..NE/2-1, y rows NE/2..
    row = lax.broadcasted_iota(jnp.int32, (NE, tm), 0)
    coord_sel = jnp.where(row >= NE // 2, y, x)            # (NE, TM)
    enc = jnp.sin(coord_sel * freq + phase)                # sin(t + pi/2) = cos(t)
    # (BARF coarse-to-fine weighting is folded into w0e / w1e in the wrapper.)

    # layer 0:  W0^T @ [coord ; enc] + b0   (coord part as VPU broadcast-FMAs)
    w0cb = w0cb_ref[...]                                   # (H, 3) = [wx | wy | b]
    feat = (jnp.dot(w0e_ref[...], enc, preferred_element_type=jnp.float32)
            + w0cb[:, 0:1] * x + w0cb[:, 1:2] * y + w0cb[:, 2:3])
    feat = jnp.maximum(feat, 0.0)                          # ReLU

    # layer 1 (skip concat == partial sums of three streams)
    w1cb = w1cb_ref[...]                                   # (H, 3)
    feat = (jnp.dot(w1f_ref[...], feat, preferred_element_type=jnp.float32)
            + jnp.dot(w1e_ref[...], enc, preferred_element_type=jnp.float32)
            + w1cb[:, 0:1] * x + w1cb[:, 1:2] * y + w1cb[:, 2:3])
    feat = jnp.maximum(feat, 0.0)                          # ReLU

    # output head + sigmoid, lane-dense (3, TM) store
    rgb = (jnp.dot(w2_ref[...], feat, preferred_element_type=jnp.float32)
           + b2_ref[...])
    out_ref[...] = jax.nn.sigmoid(rgb).astype(out_ref.dtype)


# ------------------------------------ wrapper ------------------------------------
def neural_image_function(coord_2D, params, progress):
    """coord_2D: (B, N, 2) float32 in [-1, 1]; params: [(W, b)] * 3; progress: scalar."""
    B, N, _ = coord_2D.shape
    M = B * N
    coord = coord_2D.reshape(M, 2).astype(jnp.float32)

    # Tile sizing: as large as practical (multiple of 128); pad M instead of asserting.
    m128 = ((M + 127) // 128) * 128
    TM = min(TM_MAX, m128)
    M_pad = ((M + TM - 1) // TM) * TM
    coord_t = jnp.pad(coord, ((0, M_pad - M), (0, 0))).T           # (2, M_pad)

    # BARF c2f per-frequency weights — folded directly into the enc weights below.
    start, end = BARF_C2F
    alpha = (progress - start) / (end - start) * L_2D
    kk = jnp.arange(L_2D, dtype=jnp.float32)
    wk = (1.0 - jnp.cos(jnp.clip(alpha - kk, 0.0, 1.0) * jnp.pi)) / 2.0
    wenc_col = jnp.tile(wk, 4)[:, None]                            # (NE, 1)

    (W0, b0), (W1, b1), (W2, b2) = params
    H = W0.shape[1]
    w0e_t = (W0[2:] * wenc_col).T                                  # (H, NE)
    w0cb = jnp.concatenate([W0[:2].T, b0.T], axis=1)               # (H, 3)
    w1f_t = W1[:H].T                                               # (H, H)
    w1e_t = (W1[H + 2:] * wenc_col).T                              # (H, NE)
    w1cb = jnp.concatenate([W1[H:H + 2].T, b1.T], axis=1)          # (H, 3)
    w2_t = W2.T                                                    # (3, H)
    b2_t = b2.T                                                    # (3, 1)

    e = np.arange(NE)
    enc_const = jnp.asarray(np.stack(
        [(2.0 ** (e % L_2D)) * np.pi,                  # freq per enc row
         ((e // L_2D) % 2) * (np.pi / 2.0)],           # phase: pi/2 on cosine rows
        axis=1).astype(np.float32))                    # (NE, 2)

    full = lambda a: pl.BlockSpec(a.shape, lambda i: (0, 0))
    out_t = pl.pallas_call(
        nif_kernel,
        out_shape=jax.ShapeDtypeStruct((3, M_pad), jnp.float32),
        grid=(M_pad // TM,),
        in_specs=[
            pl.BlockSpec((2, TM), lambda i: (0, i)),   # coords, tiled over lanes
            full(enc_const),
            full(w0e_t), full(w0cb),
            full(w1f_t), full(w1e_t), full(w1cb),
            full(w2_t), full(b2_t),
        ],
        out_specs=pl.BlockSpec((3, TM), lambda i: (0, i)),
        compiler_params=pltpu.CompilerParams(dimension_semantics=("parallel",)),
    )(coord_t, enc_const, w0e_t, w0cb, w1f_t, w1e_t, w1cb, w2_t, b2_t)

    return out_t[:, :M].T.reshape(B, N, 3)


# --------------------------- deterministic parameter init ---------------------------
def build_layer_dims():
    L = list(zip(RAW_LAYERS[:-1], RAW_LAYERS[1:]))
    dims = []
    for li, (k_in, k_out) in enumerate(L):
        if li == 0:
            k_in = INPUT_2D_DIM
        if li in SKIP:
            k_in += INPUT_2D_DIM
        dims.append((k_in, k_out))
    return dims


def init_params(key):
    """torch.nn.Linear-style init (U(+-1/sqrt(fan_in))), W stored as (in, out)."""
    params = []
    for li, (k_in, k_out) in enumerate(build_layer_dims()):
        key, kw, kb = jax.random.split(key, 3)
        bound = 1.0 / math.sqrt(k_in)
        W = jax.random.uniform(kw, (k_in, k_out), jnp.float32, -bound, bound)
        b = jax.random.uniform(kb, (1, k_out), jnp.float32, -bound, bound)
        if BARF_C2F is not None and li == 0:
            scale = math.sqrt(INPUT_2D_DIM / 2.0)
            W, b = W * scale, b * scale
        params.append((W, b))
    return params


# --------------------------------- pure-JAX reference ---------------------------------
def reference_forward(coord_2D, params, progress):
    x = coord_2D.astype(jnp.float32)
    freq = (2.0 ** jnp.arange(L_2D, dtype=jnp.float32)) * jnp.pi
    spectrum = x[..., None] * freq                                   # (B,N,2,L)
    enc = jnp.stack([jnp.sin(spectrum), jnp.cos(spectrum)], axis=-2) # (B,N,2,2,L)
    enc = enc.reshape(*x.shape[:-1], -1)                             # (B,N,4L)
    start, end = BARF_C2F
    alpha = (progress - start) / (end - start) * L_2D
    kk = jnp.arange(L_2D, dtype=jnp.float32)
    w = (1.0 - jnp.cos(jnp.clip(alpha - kk, 0.0, 1.0) * jnp.pi)) / 2.0
    enc = (enc.reshape(-1, L_2D) * w).reshape(enc.shape)
    points_enc = jnp.concatenate([x, enc], axis=-1)
    feat = points_enc
    for li, (W, b) in enumerate(params):
        if li in SKIP:
            feat = jnp.concatenate([feat, points_enc], axis=-1)
        feat = feat @ W + b[0]
        if li != len(params) - 1:
            feat = jax.nn.relu(feat)
    return jax.nn.sigmoid(feat)


if __name__ == "__main__":
    key = jax.random.PRNGKey(0)
    kp, kc = jax.random.split(key)
    params = init_params(kp)

    B, Himg, Wimg = 2, 16, 16                     # coord_2D: (2, 256, 2) -> M = 512
    coord_2D = jax.random.uniform(kc, (B, Himg * Wimg, 2), jnp.float32, -1.0, 1.0)
    progress = jnp.float32(0.3)                   # self.progress (nontrivial c2f weights)

    out = neural_image_function(coord_2D, params, progress)
    out = jax.block_until_ready(out)

    ref = reference_forward(coord_2D, params, progress)
    assert out.shape == (B, Himg * Wimg, 3)
    assert bool(jnp.all(jnp.isfinite(out)))
    err = float(jnp.max(jnp.abs(out - ref)))
    assert err < 2e-3, f"max abs err = {err}"
    print("KERNEL_OK")
</pallas_src>

<mosaic_0001>
module attributes {stable_mosaic.version = 11 : i64} {
  func.func @nif_kernel(%arg0: i32, %arg1: memref<2x512xf32, #tpu.memory_space<vmem>>, %arg2: memref<16x2xf32, #tpu.memory_space<vmem>>, %arg3: memref<32x16xf32, #tpu.memory_space<vmem>>, %arg4: memref<32x3xf32, #tpu.memory_space<vmem>>, %arg5: memref<32x32xf32, #tpu.memory_space<vmem>>, %arg6: memref<32x16xf32, #tpu.memory_space<vmem>>, %arg7: memref<32x3xf32, #tpu.memory_space<vmem>>, %arg8: memref<3x32xf32, #tpu.memory_space<vmem>>, %arg9: memref<3x1xf32, #tpu.memory_space<vmem>>, %arg10: memref<3x512xf32, #tpu.memory_space<vmem>>) attributes {dimension_semantics = [#tpu.dimension_semantics<parallel>], iteration_bounds = array<i64: 1>, scalar_prefetch = 0 : i64, scratch_operands = 0 : i64, tpu.core_type = #tpu.core_type<tc>, window_params = [{transform_indices = @transform_0, window_bounds = array<i64: 2, 512>}, {pipeline_mode = #tpu.pipeline_mode<synchronous>, transform_indices = @transform_1, window_bounds = array<i64: 16, 2>}, {pipeline_mode = #tpu.pipeline_mode<synchronous>, transform_indices = @transform_2, window_bounds = array<i64: 32, 16>}, {pipeline_mode = #tpu.pipeline_mode<synchronous>, transform_indices = @transform_3, window_bounds = array<i64: 32, 3>}, {pipeline_mode = #tpu.pipeline_mode<synchronous>, transform_indices = @transform_4, window_bounds = array<i64: 32, 32>}, {pipeline_mode = #tpu.pipeline_mode<synchronous>, transform_indices = @transform_5, window_bounds = array<i64: 32, 16>}, {pipeline_mode = #tpu.pipeline_mode<synchronous>, transform_indices = @transform_6, window_bounds = array<i64: 32, 3>}, {pipeline_mode = #tpu.pipeline_mode<synchronous>, transform_indices = @transform_7, window_bounds = array<i64: 3, 32>}, {pipeline_mode = #tpu.pipeline_mode<synchronous>, transform_indices = @transform_8, window_bounds = array<i64: 3, 1>}, {transform_indices = @transform_9, window_bounds = array<i64: 3, 512>}]} {
    %c0 = arith.constant 0 : index
    %c0_0 = arith.constant 0 : index
    %0 = vector.load %arg1[%c0, %c0_0] : memref<2x512xf32, #tpu.memory_space<vmem>>, vector<1x512xf32>
    %c1 = arith.constant 1 : index
    %c0_1 = arith.constant 0 : index
    %1 = vector.load %arg1[%c1, %c0_1] : memref<2x512xf32, #tpu.memory_space<vmem>>, vector<1x512xf32>
    %c0_2 = arith.constant 0 : index
    %c0_3 = arith.constant 0 : index
    %2 = vector.load %arg2[%c0_2, %c0_3] : memref<16x2xf32, #tpu.memory_space<vmem>>, vector<16x2xf32>
    %3 = vector.extract_strided_slice %2 {offsets = [0, 0], sizes = [16, 1], strides = [1, 1]} : vector<16x2xf32> to vector<16x1xf32>
    %4 = vector.extract_strided_slice %2 {offsets = [0, 1], sizes = [16, 1], strides = [1, 1]} : vector<16x2xf32> to vector<16x1xf32>
    %5 = tpu.iota {dimensions = array<i32: 0>} : vector<16x512xi32>
    %c8_i32 = arith.constant 8 : i32
    %6 = vector.broadcast %c8_i32 : i32 to vector<16x512xi32>
    %7 = arith.cmpi sge, %5, %6 : vector<16x512xi32>
    %8 = vector.shape_cast %1 : vector<1x512xf32> to vector<1x512xf32>
    %9 = vector.broadcast %8 : vector<1x512xf32> to vector<16x512xf32>
    %10 = vector.shape_cast %0 : vector<1x512xf32> to vector<1x512xf32>
    %11 = vector.broadcast %10 : vector<1x512xf32> to vector<16x512xf32>
    %12 = arith.select %7, %9, %11 : vector<16x512xi1>, vector<16x512xf32>
    %13 = vector.broadcast %3 : vector<16x1xf32> to vector<16x512xf32>
    %14 = arith.mulf %12, %13 : vector<16x512xf32>
    %15 = vector.broadcast %4 : vector<16x1xf32> to vector<16x512xf32>
    %16 = arith.addf %14, %15 : vector<16x512xf32>
    %17 = math.sin %16 : vector<16x512xf32>
    %c0_4 = arith.constant 0 : index
    %c0_5 = arith.constant 0 : index
    %18 = vector.load %arg4[%c0_4, %c0_5] : memref<32x3xf32, #tpu.memory_space<vmem>>, vector<32x3xf32>
    %c0_6 = arith.constant 0 : index
    %c0_7 = arith.constant 0 : index
    %19 = vector.load %arg3[%c0_6, %c0_7] : memref<32x16xf32, #tpu.memory_space<vmem>>, vector<32x16xf32>
    %cst = arith.constant dense<0.000000e+00> : vector<32x512xf32>
    %20 = tpu.matmul %19, %17, %cst {dimension_numbers = #tpu.dot_dimension_numbers<[1], [0], [0], [1], [0, 0, 1, 1], [], []>} : vector<32x16xf32>, vector<16x512xf32>, vector<32x512xf32> -> vector<32x512xf32>
    %21 = vector.extract_strided_slice %18 {offsets = [0, 0], sizes = [32, 1], strides = [1, 1]} : vector<32x3xf32> to vector<32x1xf32>
    %22 = vector.broadcast %21 : vector<32x1xf32> to vector<32x512xf32>
    %23 = vector.broadcast %0 : vector<1x512xf32> to vector<32x512xf32>
    %24 = arith.mulf %22, %23 : vector<32x512xf32>
    %25 = arith.addf %20, %24 : vector<32x512xf32>
    %26 = vector.extract_strided_slice %18 {offsets = [0, 1], sizes = [32, 1], strides = [1, 1]} : vector<32x3xf32> to vector<32x1xf32>
    %27 = vector.broadcast %26 : vector<32x1xf32> to vector<32x512xf32>
    %28 = vector.broadcast %1 : vector<1x512xf32> to vector<32x512xf32>
    %29 = arith.mulf %27, %28 : vector<32x512xf32>
    %30 = arith.addf %25, %29 : vector<32x512xf32>
    %31 = vector.extract_strided_slice %18 {offsets = [0, 2], sizes = [32, 1], strides = [1, 1]} : vector<32x3xf32> to vector<32x1xf32>
    %32 = vector.broadcast %31 : vector<32x1xf32> to vector<32x512xf32>
    %33 = arith.addf %30, %32 : vector<32x512xf32>
    %cst_8 = arith.constant 0.000000e+00 : f32
    %34 = vector.broadcast %cst_8 : f32 to vector<32x512xf32>
    %35 = arith.maximumf %33, %34 : vector<32x512xf32>
    %c0_9 = arith.constant 0 : index
    %c0_10 = arith.constant 0 : index
    %36 = vector.load %arg7[%c0_9, %c0_10] : memref<32x3xf32, #tpu.memory_space<vmem>>, vector<32x3xf32>
    %c0_11 = arith.constant 0 : index
    %c0_12 = arith.constant 0 : index
    %37 = vector.load %arg5[%c0_11, %c0_12] : memref<32x32xf32, #tpu.memory_space<vmem>>, vector<32x32xf32>
    %cst_13 = arith.constant dense<0.000000e+00> : vector<32x512xf32>
    %38 = tpu.matmul %37, %35, %cst_13 {dimension_numbers = #tpu.dot_dimension_numbers<[1], [0], [0], [1], [0, 0, 1, 1], [], []>} : vector<32x32xf32>, vector<32x512xf32>, vector<32x512xf32> -> vector<32x512xf32>
    %c0_14 = arith.constant 0 : index
    %c0_15 = arith.constant 0 : index
    %39 = vector.load %arg6[%c0_14, %c0_15] : memref<32x16xf32, #tpu.memory_space<vmem>>, vector<32x16xf32>
    %cst_16 = arith.constant dense<0.000000e+00> : vector<32x512xf32>
    %40 = tpu.matmul %39, %17, %cst_16 {dimension_numbers = #tpu.dot_dimension_numbers<[1], [0], [0], [1], [0, 0, 1, 1], [], []>} : vector<32x16xf32>, vector<16x512xf32>, vector<32x512xf32> -> vector<32x512xf32>
    %41 = arith.addf %38, %40 : vector<32x512xf32>
    %42 = vector.extract_strided_slice %36 {offsets = [0, 0], sizes = [32, 1], strides = [1, 1]} : vector<32x3xf32> to vector<32x1xf32>
    %43 = vector.broadcast %42 : vector<32x1xf32> to vector<32x512xf32>
    %44 = vector.broadcast %0 : vector<1x512xf32> to vector<32x512xf32>
    %45 = arith.mulf %43, %44 : vector<32x512xf32>
    %46 = arith.addf %41, %45 : vector<32x512xf32>
    %47 = vector.extract_strided_slice %36 {offsets = [0, 1], sizes = [32, 1], strides = [1, 1]} : vector<32x3xf32> to vector<32x1xf32>
    %48 = vector.broadcast %47 : vector<32x1xf32> to vector<32x512xf32>
    %49 = vector.broadcast %1 : vector<1x512xf32> to vector<32x512xf32>
    %50 = arith.mulf %48, %49 : vector<32x512xf32>
    %51 = arith.addf %46, %50 : vector<32x512xf32>
    %52 = vector.extract_strided_slice %36 {offsets = [0, 2], sizes = [32, 1], strides = [1, 1]} : vector<32x3xf32> to vector<32x1xf32>
    %53 = vector.broadcast %52 : vector<32x1xf32> to vector<32x512xf32>
    %54 = arith.addf %51, %53 : vector<32x512xf32>
    %cst_17 = arith.constant 0.000000e+00 : f32
    %55 = vector.broadcast %cst_17 : f32 to vector<32x512xf32>
    %56 = arith.maximumf %54, %55 : vector<32x512xf32>
    %c0_18 = arith.constant 0 : index
    %c0_19 = arith.constant 0 : index
    %57 = vector.load %arg8[%c0_18, %c0_19] : memref<3x32xf32, #tpu.memory_space<vmem>>, vector<3x32xf32>
    %cst_20 = arith.constant dense<0.000000e+00> : vector<3x512xf32>
    %58 = tpu.matmul %57, %56, %cst_20 {dimension_numbers = #tpu.dot_dimension_numbers<[1], [0], [0], [1], [0, 0, 1, 1], [], []>} : vector<3x32xf32>, vector<32x512xf32>, vector<3x512xf32> -> vector<3x512xf32>
    %c0_21 = arith.constant 0 : index
    %c0_22 = arith.constant 0 : index
    %59 = vector.load %arg9[%c0_21, %c0_22] : memref<3x1xf32, #tpu.memory_space<vmem>>, vector<3x1xf32>
    %60 = vector.broadcast %59 : vector<3x1xf32> to vector<3x512xf32>
    %61 = arith.addf %58, %60 : vector<3x512xf32>
    %62 = arith.negf %61 : vector<3x512xf32>
    %63 = math.exp %62 : vector<3x512xf32>
    %cst_23 = arith.constant 1.000000e+00 : f32
    %64 = vector.broadcast %cst_23 : f32 to vector<3x512xf32>
    %65 = arith.addf %64, %63 : vector<3x512xf32>
    %66 = arith.divf %64, %65 : vector<3x512xf32>
    %c0_24 = arith.constant 0 : index
    %c0_25 = arith.constant 0 : index
    %67 = vector.load %arg10[%c0_24, %c0_25] : memref<3x512xf32, #tpu.memory_space<vmem>>, vector<3x512xf32>
    tpu.vector_store %arg10[%c0_24, %c0_25], %66 {strides = array<i32>} : memref<3x512xf32, #tpu.memory_space<vmem>>, vector<3x512xf32>,
    return
  }
  func.func @transform_0(%arg0: i32) -> (i32, i32) {
    %c0_i32 = arith.constant 0 : i32
    %c0_i32_0 = arith.constant 0 : i32
    return %c0_i32, %arg0 : i32, i32
  }
  func.func @transform_1(%arg0: i32) -> (i32, i32) {
    %c0_i32 = arith.constant 0 : i32
    %c0_i32_0 = arith.constant 0 : i32
    %c0_i32_1 = arith.constant 0 : i32
    return %c0_i32, %c0_i32_0 : i32, i32
  }
  func.func @transform_2(%arg0: i32) -> (i32, i32) {
    %c0_i32 = arith.constant 0 : i32
    %c0_i32_0 = arith.constant 0 : i32
    %c0_i32_1 = arith.constant 0 : i32
    return %c0_i32, %c0_i32_0 : i32, i32
  }
  func.func @transform_3(%arg0: i32) -> (i32, i32) {
    %c0_i32 = arith.constant 0 : i32
    %c0_i32_0 = arith.constant 0 : i32
    %c0_i32_1 = arith.constant 0 : i32
    return %c0_i32, %c0_i32_0 : i32, i32
  }
  func.func @transform_4(%arg0: i32) -> (i32, i32) {
    %c0_i32 = arith.constant 0 : i32
    %c0_i32_0 = arith.constant 0 : i32
    %c0_i32_1 = arith.constant 0 : i32
    return %c0_i32, %c0_i32_0 : i32, i32
  }
  func.func @transform_5(%arg0: i32) -> (i32, i32) {
    %c0_i32 = arith.constant 0 : i32
    %c0_i32_0 = arith.constant 0 : i32
    %c0_i32_1 = arith.constant 0 : i32
    return %c0_i32, %c0_i32_0 : i32, i32
  }
  func.func @transform_6(%arg0: i32) -> (i32, i32) {
    %c0_i32 = arith.constant 0 : i32
    %c0_i32_0 = arith.constant 0 : i32
    %c0_i32_1 = arith.constant 0 : i32
    return %c0_i32, %c0_i32_0 : i32, i32
  }
  func.func @transform_7(%arg0: i32) -> (i32, i32) {
    %c0_i32 = arith.constant 0 : i32
    %c0_i32_0 = arith.constant 0 : i32
    %c0_i32_1 = arith.constant 0 : i32
    return %c0_i32, %c0_i32_0 : i32, i32
  }
  func.func @transform_8(%arg0: i32) -> (i32, i32) {
    %c0_i32 = arith.constant 0 : i32
    %c0_i32_0 = arith.constant 0 : i32
    %c0_i32_1 = arith.constant 0 : i32
    return %c0_i32, %c0_i32_0 : i32, i32
  }
  func.func @transform_9(%arg0: i32) -> (i32, i32) {
    %c0_i32 = arith.constant 0 : i32
    %c0_i32_0 = arith.constant 0 : i32
    return %c0_i32, %arg0 : i32, i32
  }
}

</mosaic_0001>

<bundles_post_ra>
// kernel: tpu_custom_call.1
= control target key start
LH: loop header
LB: loop body
LE: loop exit
PB: predicated region body
PF: predicated region fallthrough
CT: control target
= control target key end

     0   :  { %v44_v1 = vlaneseq  ;;  %v3539_v2 = vmov 1   ;;  %v3537_v3 = vmov 0   ;;  %s3527_s0 = inlined_call_operand.vmem [shape: f32[2,512], index: 0, kind: input, shape index: {}]   ;;  %s3528_s1 = inlined_call_operand.vmem [shape: f32[16,2], index: 1, kind: input, shape index: {}]   ;;  %s3529_s2 = inlined_call_operand.vmem [shape: f32[32,16], index: 2, kind: input, shape index: {}]   ;;  %s3530_s3 = inlined_call_operand.vmem [shape: f32[32,3], index: 3, kind: input, shape index: {}]   ;;  %s3531_s4 = inlined_call_operand.vmem [shape: f32[32,32], index: 4, kind: input, shape index: {}]   ;;  %s3532_s5 = inlined_call_operand.vmem [shape: f32[32,16], index: 5, kind: input, shape index: {}]   ;;  %s3533_s6 = inlined_call_operand.vmem [shape: f32[32,3], index: 6, kind: input, shape index: {}]   ;;  %s3534_s7 = inlined_call_operand.vmem [shape: f32[3,32], index: 7, kind: input, shape index: {}]   ;;  %s3535_s8 = inlined_call_operand.vmem [shape: f32[3,1], index: 8, kind: input, shape index: {}]   ;;  %s3536_s9 = inlined_call_operand.hbm [shape: f32[3,512], index: 9, kind: output, shape index: {}]  }
   0x1   :  { %v37_v0 = vld [vmem:[%s3528_s1 + $0x8] sm:$0xff]  ;;  %2138 = vset.pattern.permute.xlu1 %v3539_v2  ;;  %2137 = vset.pattern.permute.xlu0 %v3537_v3 }
   0x2   :  { %14 = vsyncpa [#allocation3], 0  ;;  %116 = vperm.xlu1 %2138, %v37_v0   ;;  %100 = vperm.xlu0 %2137, %v37_v0   ;;  %v45_v4 = vshrl.u32 %v44_v1, 7  ;;  %v36_v5 = vld [vmem:[%s3528_s1] sm:$0xff]  ;;  %v962_v8 = vld [vmem:[%s3530_s3 + $0x18] sm:$0xff] }
   0x3   :  { %v33_v6 = vld [vmem:[%s3527_s0] ss:$2 sm:$0xf]  ;;  %v2031_v14 = vld [vmem:[%s3527_s0 + $0x1] ss:$2 sm:$0xf] }
   0x4   :  { %v54_v7 = vsub.s32 2, %v45_v4  ;;  %v959_v10 = vld [vmem:[%s3530_s3] sm:$0xff]  ;;  %v46_v11 = vsub.s32 0, %v45_v4  ;;  %v50_v12 = vsub.s32 1, %v45_v4  ;;  %v58_v13 = vsub.s32 3, %v45_v4 }
   0x6   :  { %112 = vperm.xlu1 %2138, %v36_v5   ;;  %95 = vperm.xlu0 %2137, %v36_v5   ;;  %v2299_v9 = vrot.slane %v33_v6, %v54_v7  ;;  %v2309_v15 = vrot.slane %v2031_v14, %v46_v11  ;;  %v2311_v16 = vrot.slane %v2031_v14, %v50_v12 }
   0x7   :  { %v2313_v17 = vrot.slane %v2031_v14, %v54_v7  ;;  %v2315_v18 = vrot.slane %v2031_v14, %v58_v13  ;;  %v2333_v33 = vrot.slane %v33_v6, %v46_v11  ;;  %v2335_v34 = vrot.slane %v33_v6, %v50_v12 }
   0x8   :  { %v2337_v42 = vrot.slane %v33_v6, %v58_v13  ;;  %v3544_v13 = vmov 683565275  }
   0xa   :  { %984 = vperm.xlu0 %2137, %v962_v8   ;;  %2139 = vset.pattern.permute.xlu1 %v3537_v3 }
   0xe   :  { %969 = vperm.xlu0 %2137, %v959_v10  }
  0x12   :  { %2141 = vset.pattern.permute.xlu0 %v3539_v2 }
  0x13   :  { %1207 = vperm.xlu0 %2141, %v962_v8  }
  0x17   :  { %1195 = vperm.xlu0 %2141, %v959_v10  }
  0x7d   :  { %v101_v19 = vpop.permute.xlu0 %100  ;;  %v117_v24 = vpop.permute.xlu1 %116 }
  0x7e   :  { %v107_v20 = vmul.f32 %v101_v19, %v2309_v15  ;;  %v108_v21 = vmul.f32 %v101_v19, %v2311_v16  ;;  %v109_v22 = vmul.f32 %v101_v19, %v2313_v17  ;;  %v110_v23 = vmul.f32 %v101_v19, %v2315_v18 }
  0x7f   :  { %v2227_v19 = vmov 2475754826  }
  0x80   :  { %v2321_v25 = vadd.f32 %v117_v24, %v107_v20  ;;  %v2323_v26 = vadd.f32 %v117_v24, %v108_v21  ;;  %v2325_v27 = vadd.f32 %v117_v24, %v109_v22  ;;  %v2327_v28 = vadd.f32 %v117_v24, %v110_v23 }
  0x81   :  { %v96_v39 = vpop.permute.xlu0 %95  ;;  %v113_v50 = vpop.permute.xlu1 %112 }
  0x82   :  { %v546_v29 = vand.u32 2139095040, %v2321_v25  ;;  %v650_v30 = vand.u32 2139095040, %v2323_v26  ;;  %v754_v31 = vand.u32 2139095040, %v2325_v27  ;;  %v858_v32 = vand.u32 2139095040, %v2327_v28 }
  0x83   :  { %v104_v43 = vmul.f32 %v96_v39, %v2335_v34  ;;  %v103_v47 = vmul.f32 %v96_v39, %v2333_v33  ;;  %v105_v49 = vmul.f32 %v96_v39, %v2299_v9  ;;  %v106_v51 = vmul.f32 %v96_v39, %v2337_v42 }
  0x84   :  { %v547_v35 = vshrl.u32 %v546_v29, 23  ;;  %v651_v36 = vshrl.u32 %v650_v30, 23  ;;  %v755_v37 = vshrl.u32 %v754_v31, 23  ;;  %v859_v38 = vshrl.u32 %v858_v32, 23 }
  0x85   :  { %v2343_v53 = vadd.f32 %v113_v50, %v104_v43  ;;  %v2345_v56 = vadd.f32 %v113_v50, %v103_v47  ;;  %v2347_v58 = vadd.f32 %v113_v50, %v105_v49  ;;  %v2349_v59 = vadd.f32 %v113_v50, %v106_v51 }
  0x86   :  { %v2052_v40 = vadd.s32 4294967169, %v651_v36  ;;  %v2060_v41 = vadd.s32 4294967169, %v859_v38  ;;  %v2048_v44 = vadd.s32 4294967169, %v547_v35  ;;  %v2056_v46 = vadd.s32 4294967169, %v755_v37 }
  0x87   :  { %v234_v60 = vand.u32 2139095040, %v2343_v53  ;;  %v130_v62 = vand.u32 2139095040, %v2345_v56  ;;  %v338_v0 = vand.u32 2139095040, %v2347_v58  ;;  %v647_v1 = vand.u32 2147483647, %v2323_v26 }
  0x88   :  { %v657_v45 = vadd.s32 1, %v2052_v40  ;;  %v865_v48 = vadd.s32 1, %v2060_v41  ;;  %v553_v54 = vadd.s32 1, %v2048_v44  ;;  %v761_v55 = vadd.s32 1, %v2056_v46 }
  0x89   :  { %v442_v4 = vand.u32 2139095040, %v2349_v59  ;;  %v235_v8 = vshrl.u32 %v234_v60, 23  ;;  %v131_v10 = vshrl.u32 %v130_v62, 23  ;;  %v2362_v11 = vshrl.u32 %v338_v0, 23 }
  0x8a   :  { %vm658_vm0 = vcmp.gt.s32.totalorder %v657_v45, 0  ;;  %vm866_vm1 = vcmp.gt.s32.totalorder %v865_v48, 0  ;;  %vm554_vm2 = vcmp.gt.s32.totalorder %v553_v54, 0  ;;  %vm762_vm3 = vcmp.gt.s32.totalorder %v761_v55, 0 }
  0x8b   :  { %v659_v52 = vsel %vm658_vm0, %v657_v45, 0  ;;  %v867_v61 = vsel %vm866_vm1, %v865_v48, 0  ;;  %v2356_v5 = vsel %vm554_vm2, %v553_v54, 0  ;;  %v2358_v6 = vsel %vm762_vm3, %v761_v55, 0 }
  0x8c   :  { %v661_v57 = vand.u32 31, %v659_v52  ;;  %v2360_v7 = vand.u32 31, %v867_v61  ;;  %v654_v12 = vand.u32 8388607, %v647_v1  ;;  %v2369_v21 = vand.u32 31, %v2356_v5 }
  0x8d   :  { %v660_v22 = vshrl.u32 %v659_v52, 5  ;;  %v2372_v23 = vand.u32 31, %v2358_v6  ;;  %v443_v24 = vshrl.u32 %v442_v4, 23  ;;  %v2374_v29 = vshrl.u32 %v867_v61, 5 }
  0x8e   :  { %v662_v63 = vsub.s32 32, %v661_v57  ;;  %v664_v14 = vshll.u32 %v3544_v13, %v661_v57  ;;  %v2377_v30 = vsub.s32 32, %v2360_v7  ;;  %v2036_v31 = vadd.s32 4294967169, %v235_v8 }
  0x8f   :  { %v667_v35 = vshll.u32 %v2227_v19, %v661_v57  ;;  %v2228_v36 = vmov 2131351028   ;;  %v2229_v39 = vmov 2102212464   ;;  %v655_v41 = vor.u32 8388608, %v654_v12 }
  0x90   :  { %v665_v20 = vshrl.u32 %v2227_v19, %v662_v63  ;;  %v668_v37 = vshrl.u32 %v2228_v36, %v662_v63  ;;  %v670_v38 = vshll.u32 %v2228_v36, %v661_v57  ;;  %v671_v40 = vshrl.u32 %v2229_v39, %v662_v63 }
  0x91   :  { %v663_v43 = vshrl.u32 %v3544_v13, %v662_v63  ;;  %v673_v44 = vshll.u32 %v2229_v39, %v661_v57  ;;  %v2230_v45 = vmov 920167782   ;;  %v3542_v50 = vmov 1326507024  }
  0x92   :  { %v666_v32 = vor.u32 %v665_v20, %v664_v14  ;;  %v674_v46 = vshrl.u32 %v2230_v45, %v662_v63  ;;  %v669_v47 = vor.u32 %v668_v37, %v667_v35  ;;  %v672_v48 = vor.u32 %v671_v40, %v670_v38 }
  0x93   :  { %v676_v49 = vshll.u32 %v2230_v45, %v661_v57  ;;  %v677_v51 = vshrl.u32 %v3542_v50, %v662_v63  ;;  %vm679_vm4 = vcmp.lt.s32.totalorder %v660_v22, 1  ;;  %vm681_vm5 = vcmp.lt.s32.totalorder %v660_v22, 3 }
  0x94   :  { %v675_v52 = vor.u32 %v674_v46, %v673_v44  ;;  %vm682_vm6 = vcmp.lt.s32.totalorder %v660_v22, 4  ;;  %v683_v55 = vsel %vm679_vm4, %v663_v43, %v666_v32  ;;  %v687_v61 = vsel %vm679_vm4, %v666_v32, %v669_v47 }
  0x95   :  { %v678_v54 = vor.u32 %v677_v51, %v676_v49  ;;  %v684_v60 = vsel %vm682_vm6, %v672_v48, 2102212464  ;;  %v2388_v62 = vadd.s32 1, %v2036_v31  ;;  %v691_v8 = vsel %vm679_vm4, %v669_v47, %v672_v48 }
  0x96   :  { %v685_v0 = vsel %vm681_vm5, %v669_v47, %v684_v60  ;;  %v688_v4 = vsel %vm682_vm6, %v675_v52, 920167782  ;;  %vm680_vm7 = vcmp.lt.s32.totalorder %v660_v22, 2  ;;  %v695_v14 = vshll.u32 %v655_v41, 8 }
  0x97   :  { %v689_v57 = vsel %vm681_vm5, %v672_v48, %v688_v4  ;;  %v692_v12 = vsel %vm682_vm6, %v678_v54, 1326507024  ;;  %v686_v63 = vsel %vm680_vm7, %v683_v55, %v685_v0  ;;  %v855_v37 = vand.u32 2147483647, %v2327_v28 }
  0x98   :  { %v690_v20 = vsel %vm680_vm7, %v687_v61, %v689_v57  ;;  %v693_v35 = vsel %vm681_vm5, %v675_v52, %v692_v12  ;;  %v2394_v38 = vadd.s32 4294967169, %v131_v10  ;;  %v2044_v43 = vadd.s32 4294967169, %v443_v24 }
  0x99   :  { %v694_v32 = vsel %vm680_vm7, %v691_v8, %v693_v35  ;;  %v2396_v31 = vmul.u32.u64.low %v695_v14, %v690_v20  ;;  %v2397_v40 = vmul.u32.u64.high %v695_v14, %v690_v20, %v2396_v31  ;;  %v862_v41 = vand.u32 8388607, %v855_v37 }
  0x9a   :  { %v2400_v44 = vmul.u32.u64.low %v695_v14, %v694_v32  ;;  %v2401_v46 = vmul.u32.u64.high %v695_v14, %v694_v32, %v2400_v44  ;;  %vm242_vm8 = vcmp.gt.s32.totalorder %v2388_v62, 0  ;;  %v702_v22 = vmul.u32 %v695_v14, %v686_v63 }
  0x9b   :  { %v872_v47 = vshll.u32 %v3544_v13, %v2360_v7  ;;  %v873_v10 = vshrl.u32 %v2227_v19, %v2377_v30  ;;  %v875_v48 = vshll.u32 %v2227_v19, %v2360_v7  ;;  %v876_v24 = vshrl.u32 %v2228_v36, %v2377_v30 }
  0x9c   :  { %v878_v49 = vshll.u32 %v2228_v36, %v2360_v7  ;;  %v879_v51 = vshrl.u32 %v2229_v39, %v2377_v30  ;;  %v705_v52 = vadd.s32 1, %v2397_v40  ;;  %v881_v55 = vshll.u32 %v2229_v39, %v2360_v7 }
  0x9d   :  { %v874_v54 = vor.u32 %v873_v10, %v872_v47  ;;  %v882_v60 = vshrl.u32 %v2230_v45, %v2377_v30  ;;  %vm704_vm9 = vc.u32 %v2401_v46, %v2396_v31  ;;  %v863_v61 = vor.u32 8388608, %v862_v41 }
  0x9e   :  { %v877_v0 = vor.u32 %v876_v24, %v875_v48  ;;  %v880_v4 = vor.u32 %v879_v51, %v878_v49  ;;  %v706_v8 = vsel %vm704_vm9, %v705_v52, %v2397_v40  ;;  %v884_v12 = vshll.u32 %v2230_v45, %v2360_v7 }
  0x9f   :  { %v883_v57 = vor.u32 %v882_v60, %v881_v55  ;;  %v885_v14 = vshrl.u32 %v3542_v50, %v2377_v30  ;;  %v707_v63 = vadd.s32 %v706_v8, %v702_v22  ;;  %v871_v20 = vshrl.u32 %v3544_v13, %v2377_v30 }
  0xa0   :  { %vm887_vm10 = vcmp.lt.s32.totalorder %v2374_v29, 1  ;;  %vm888_vm11 = vcmp.lt.s32.totalorder %v2374_v29, 2  ;;  %vm889_vm12 = vcmp.lt.s32.totalorder %v2374_v29, 3  ;;  %vm890_vm13 = vcmp.lt.s32.totalorder %v2374_v29, 4 }
  0xa1   :  { %v886_v35 = vor.u32 %v885_v14, %v884_v12  ;;  %v895_v32 = vsel %vm887_vm10, %v874_v54, %v877_v0  ;;  %v708_v40 = vadd.s32 536870912, %v707_v63  ;;  %v892_v44 = vsel %vm890_vm13, %v880_v4, 2102212464 }
  0xa2   :  { %v896_v7 = vsel %vm890_vm13, %v883_v57, 920167782  ;;  %v899_v41 = vsel %vm887_vm10, %v877_v0, %v880_v4  ;;  %v891_v47 = vsel %vm887_vm10, %v871_v20, %v874_v54  ;;  %v903_v48 = vshll.u32 %v863_v61, 8 }
  0xa3   :  { %v897_v10 = vsel %vm889_vm12, %v880_v4, %v896_v7  ;;  %v900_v22 = vsel %vm890_vm13, %v886_v35, 1326507024  ;;  %v709_v24 = vshrl.u32 %v708_v40, 30  ;;  %v893_v30 = vsel %vm889_vm12, %v877_v0, %v892_v44 }
  0xa4   :  { %v898_v49 = vsel %vm888_vm11, %v895_v32, %v897_v10  ;;  %v901_v51 = vsel %vm889_vm12, %v883_v57, %v900_v22  ;;  %v449_v52 = vadd.s32 1, %v2044_v43  ;;  %v243_v54 = vsel %vm242_vm8, %v2388_v62, 0 }
  0xa5   :  { %v902_v55 = vsel %vm888_vm11, %v899_v41, %v901_v51  ;;  %v2440_v60 = vmul.u32.u64.low %v903_v48, %v898_v49  ;;  %v2441_v8 = vmul.u32.u64.high %v903_v48, %v898_v49, %v2440_v60  ;;  %v710_v4 = vshll.u32 %v709_v24, 30 }
  0xa6   :  { %v2447_v61 = vmul.u32.u64.low %v903_v48, %v902_v55  ;;  %v2448_v12 = vmul.u32.u64.high %v903_v48, %v902_v55, %v2447_v61  ;;  %v2451_v0 = vshrl.u32 %v2356_v5, 5  ;;  %v2040_v43 = vadd.s32 4294967169, %v2362_v11 }
  0xa7   :  { %v894_v57 = vsel %vm888_vm11, %v891_v47, %v893_v30  ;;  %v558_v14 = vsub.s32 32, %v2369_v21  ;;  %v2458_v20 = vshrl.u32 %v2358_v6, 5  ;;  %v2461_v35 = vsub.s32 32, %v2372_v23 }
  0xa8   :  { %v2463_v62 = vsub.s32 %v707_v63, %v710_v4  ;;  %v2466_v32 = vadd.s32 1, %v2394_v38  ;;  %v2468_v5 = vand.u32 31, %v243_v54  ;;  %vm450_vm14 = vcmp.gt.s32.totalorder %v449_v52, 0 }
  0xa9   :  { %v913_v11 = vadd.s32 1, %v2441_v8  ;;  %v733_v40 = vsub.s32 4, %v709_v24  ;;  %v910_v44 = vmul.u32 %v903_v48, %v894_v57  ;;  %vm912_vm15 = vc.u32 %v2448_v12, %v2440_v60 }
  0xaa   :  { %v713_v29 = vsub.s32 0, %v2463_v62  ;;  %v2474_v6 = vadd.s32 1, %v2040_v43  ;;  %vm2478_vm0 = vcmp.le.f32.partialorder %v647_v1, 0.7853982  ;;  %vm649_vm1 = vcmp.lt.s32.totalorder %v2323_v26, 0 }
  0xab   :  { %v914_v38 = vsel %vm912_vm15, %v913_v11, %v2441_v8  ;;  %v2484_v7 = vshrl.u32 %v243_v54, 5  ;;  %v3541_v10 = vand.u32 2147483647, %v2321_v25  ;;  %v2489_v22 = vsub.s32 32, %v2468_v5 }
  0xac   :  { %v2053_v41 = vmin.u32 %v713_v29, %v2463_v62  ;;  %v915_v47 = vadd.s32 %v914_v38, %v910_v44  ;;  %v2491_v48 = vsel %vm450_vm14, %v449_v52, 0  ;;  %v703_v1 = vadd.s32 %v2396_v31, %v2401_v46 }
  0xad   :  { %v570_v30 = vshrl.u32 %v2230_v45, %v558_v14  ;;  %v734_v51 = vsel %vm649_vm1, %v733_v40, %v709_v24  ;;  %v559_v55 = vshrl.u32 %v3544_v13, %v558_v14  ;;  %v561_v8 = vshrl.u32 %v2227_v19, %v558_v14 }
  0xae   :  { %v715_v49 = vclz %v2053_v41  ;;  %v916_v54 = vadd.s32 536870912, %v915_v47  ;;  %v564_v4 = vshrl.u32 %v2228_v36, %v558_v14  ;;  %v567_v61 = vshrl.u32 %v2229_v39, %v558_v14 }
  0xaf   :  { %v569_v52 = vshll.u32 %v2229_v39, %v2369_v21  ;;  %v550_v31 = vand.u32 8388607, %v3541_v10  ;;  %v560_v46 = vshll.u32 %v3544_v13, %v2369_v21  ;;  %v573_v24 = vshrl.u32 %v3542_v50, %v558_v14 }
  0xb0   :  { %v2054_v43 = vadd.s32 4294967294, %v715_v49  ;;  %v917_v57 = vshrl.u32 %v916_v54, 30  ;;  %v563_v11 = vshll.u32 %v2227_v19, %v2369_v21  ;;  %v566_v29 = vshll.u32 %v2228_v36, %v2369_v21 }
  0xb1   :  { %v571_v40 = vor.u32 %v570_v30, %v569_v52  ;;  %v736_v44 = vsel %vm2478_vm0, 0, %v734_v51  ;;  %v562_v38 = vor.u32 %v561_v8, %v560_v46  ;;  %v572_v41 = vshll.u32 %v2230_v45, %v2369_v21 }
  0xb2   :  { %vm2055_vm2 = vcmp.lt.s32.totalorder %v2054_v43, 0  ;;  %v918_v3 = vshll.u32 %v917_v57, 30  ;;  %v565_v2 = vor.u32 %v564_v4, %v563_v11  ;;  %v568_v14 = vor.u32 %v567_v61, %v566_v29 }
  0xb3   :  { %v718_v49 = vsel %vm2055_vm2, 0, %v2054_v43  ;;  %v574_v50 = vor.u32 %v573_v24, %v572_v41  ;;  %vm578_vm3 = vcmp.lt.s32.totalorder %v2451_v0, 4  ;;  %v551_v30 = vor.u32 8388608, %v550_v31 }
  0xb4   :  { %v719_v54 = vsub.s32 32, %v718_v49  ;;  %v723_v10 = vsub.s32 4294967266, %v718_v49  ;;  %v2518_v13 = vsub.s32 %v915_v47, %v918_v3  ;;  %vm575_vm4 = vcmp.lt.s32.totalorder %v2451_v0, 1 }
  0xb5   :  { %v584_v51 = vsel %vm578_vm3, %v571_v40, 920167782  ;;  %v720_v8 = vshll.u32 %v2463_v62, %v718_v49  ;;  %vm577_vm5 = vcmp.lt.s32.totalorder %v2451_v0, 3  ;;  %v583_v61 = vsel %vm575_vm4, %v562_v38, %v565_v2 }
  0xb6   :  { %v721_v21 = vshrl.u32 %v703_v1, %v719_v54  ;;  %v724_v52 = vadd.s32 127, %v723_v10  ;;  %v921_v4 = vsub.s32 0, %v2518_v13  ;;  %v585_v3 = vsel %vm577_vm5, %v568_v14, %v584_v51 }
  0xb7   :  { %v587_v47 = vsel %vm575_vm4, %v565_v2, %v568_v14  ;;  %v580_v62 = vsel %vm578_vm3, %v568_v14, 2102212464  ;;  %v588_v10 = vsel %vm578_vm3, %v574_v50, 1326507024  ;;  %v941_v46 = vsub.s32 4, %v917_v57 }
  0xb8   :  { %v722_v43 = vor.u32 %v721_v21, %v720_v8  ;;  %v725_v31 = vshll.u32 %v724_v52, 23  ;;  %v2061_v1 = vmin.u32 %v921_v4, %v2518_v13  ;;  %vm576_vm6 = vcmp.lt.s32.totalorder %v2451_v0, 2 }
  0xb9   :  { %v589_v24 = vsel %vm577_vm5, %v571_v40, %v588_v10  ;;  %v586_v29 = vsel %vm576_vm6, %v583_v61, %v585_v3  ;;  %v591_v49 = vshll.u32 %v551_v30, 8  ;;  %v740_v14 = vadd.s32 3, %v736_v44 }
  0xba   :  { %v726_v11 = vor.u32 4788187, %v725_v31  ;;  %v590_v41 = vsel %vm576_vm6, %v587_v47, %v589_v24  ;;  %v923_v54 = vclz %v2061_v1  ;;  %v579_v50 = vsel %vm575_vm4, %v559_v55, %v562_v38 }
  0xbb   :  { %v581_v51 = vsel %vm577_vm5, %v565_v2, %v580_v62  ;;  %v729_v21 = vcvt.s32.f32 %v722_v43  ;;  %v2548_v52 = vmul.u32.u64.low %v591_v49, %v590_v41  ;;  %v2549_v40 = vmul.u32.u64.high %v591_v49, %v590_v41, %v2548_v52 }
  0xbc   :  { %v727_v8 = vand.u32 2147483647, %v726_v11  ;;  %vm857_vm7 = vcmp.lt.s32.totalorder %v2327_v28, 0  ;;  %v2062_v4 = vadd.s32 4294967294, %v923_v54  ;;  %v2557_v44 = vand.u32 31, %v2491_v48 }
  0xbd   :  { %v2552_v61 = vmul.u32.u64.low %v591_v49, %v586_v29  ;;  %v2553_v3 = vmul.u32.u64.high %v591_v49, %v586_v29, %v2552_v61  ;;  %v942_v55 = vsel %vm857_vm7, %v941_v46, %v917_v57  ;;  %v3546_v2 = vand.u32 2147483647, %v2325_v27 }
  0xbe   :  { %v730_v30 = vmul.f32 %v729_v21, %v727_v8  ;;  %vm2564_vm8 = vcmp.le.f32.partialorder %v855_v37, 0.7853982  ;;  %v911_v47 = vadd.s32 %v2440_v60, %v2448_v12  ;;  %vm2063_vm9 = vcmp.lt.s32.totalorder %v2062_v4, 0 }
  0xbf   :  { %v582_v43 = vsel %vm576_vm6, %v579_v50, %v581_v51  ;;  %v2572_v62 = vand.u32 3, %v740_v14  ;;  %v926_v10 = vsel %vm2063_vm9, 0, %v2062_v4  ;;  %vm600_vm10 = vc.u32 %v2549_v40, %v2552_v61 }
  0xc0   :  { %v731_v31 = vxor.u32 2147483648, %v730_v30  ;;  %v927_v57 = vsub.s32 32, %v926_v10  ;;  %v931_v1 = vsub.s32 4294967266, %v926_v10  ;;  %v944_v37 = vsel %vm2564_vm8, 0, %v942_v55 }
  0xc1   :  { %v601_v46 = vadd.s32 1, %v2553_v3  ;;  %v928_v12 = vshll.u32 %v2518_v13, %v926_v10  ;;  %v598_v0 = vmul.u32 %v591_v49, %v582_v43  ;;  %v758_v24 = vand.u32 8388607, %v3546_v2 }
  0xc2   :  { %v732_v60 = vsel %vm649_vm1, %v731_v31, %v730_v30  ;;  %v929_v29 = vshrl.u32 %v911_v47, %v927_v57  ;;  %v932_v41 = vadd.s32 127, %v931_v1  ;;  %v769_v50 = vshrl.u32 %v2227_v19, %v2461_v35 }
  0xc3   :  { %v735_v11 = vsel %vm2478_vm0, %v2323_v26, %v732_v60  ;;  %v602_v14 = vsel %vm600_vm10, %v601_v46, %v2553_v3  ;;  %v772_v13 = vshrl.u32 %v2228_v36, %v2461_v35  ;;  %v775_v8 = vshrl.u32 %v2229_v39, %v2461_v35 }
  0xc4   :  { %2152 = vcosq.f32 %v735_v11  ;;  %v603_v54 = vadd.s32 %v602_v14, %v598_v0  ;;  %v930_v49 = vor.u32 %v929_v29, %v928_v12  ;;  %v933_v51 = vshll.u32 %v932_v41, 23 }
  0xc5   :  { %2154 = vsinq.f32 %v735_v11  ;;  %v3551_v21 = vmov 683565275   ;;  %v777_v4 = vshll.u32 %v2229_v39, %v2372_v23  ;;  %v778_v3 = vshrl.u32 %v2230_v45, %v2461_v35 }
  0xc6   :  { %v604_v63 = vadd.s32 536870912, %v603_v54  ;;  %v768_v52 = vshll.u32 %v3551_v21, %v2372_v23  ;;  %v934_v30 = vor.u32 4788187, %v933_v51  ;;  %vm545_vm11 = vcmp.lt.s32.totalorder %v2321_v25, 0 }
  0xc7   :  { %v771_v55 = vshll.u32 %v2227_v19, %v2372_v23  ;;  %v774_v47 = vshll.u32 %v2228_v36, %v2372_v23  ;;  %v3552_v43 = vmov 1326507024   ;;  %v779_v1 = vor.u32 %v778_v3, %v777_v4 }
  0xc8   :  { %v781_v31 = vshrl.u32 %v3552_v43, %v2461_v35  ;;  %v605_v10 = vshrl.u32 %v604_v63, 30  ;;  %v770_v57 = vor.u32 %v769_v50, %v768_v52  ;;  %v780_v46 = vshll.u32 %v2230_v45, %v2372_v23 }
  0xc9   :  { %v935_v60 = vand.u32 2147483647, %v934_v30  ;;  %v937_v12 = vcvt.s32.f32 %v930_v49  ;;  %v773_v0 = vor.u32 %v772_v13, %v771_v55  ;;  %v776_v11 = vor.u32 %v775_v8, %v774_v47 }
  0xca   :  { %v948_v29 = vadd.s32 3, %v944_v37  ;;  %v3553_v41 = vand.u32 2147483647, %v2321_v25  ;;  %v606_v51 = vshll.u32 %v605_v10, 30  ;;  %v782_v2 = vor.u32 %v781_v31, %v780_v46 }
  0xcb   :  { %vm786_vm13 = vcmp.lt.s32.totalorder %v2458_v20, 4  ;;  %v938_v50 = vmul.f32 %v937_v12, %v935_v60  ;;  %v759_v63 = vor.u32 8388608, %v758_v24  ;;  %v767_v23 = vshrl.u32 %v3551_v21, %v2461_v35 }
  0xcc   :  { %vm2611_vm12 = vcmp.le.f32.partialorder %v3553_v41, 0.7853982  ;;  %v792_v13 = vsel %vm786_vm13, %v779_v1, 920167782  ;;  %vm743_vm14 = vcmp.eq.s32.totalorder %v2572_v62, 0  ;;  %v2621_v37 = vsub.s32 %v603_v54, %v606_v51 }
  0xcd   :  { %v629_v49 = vsub.s32 4, %v605_v10  ;;  %vm783_vm15 = vcmp.lt.s32.totalorder %v2458_v20, 1  ;;  %vm784_vm0 = vcmp.lt.s32.totalorder %v2458_v20, 2  ;;  %v939_v8 = vxor.u32 2147483648, %v938_v50 }
  0xce   :  { %vm785_vm1 = vcmp.lt.s32.totalorder %v2458_v20, 3  ;;  %v787_v52 = vsel %vm783_vm15, %v767_v23, %v770_v57  ;;  %v795_v24 = vsel %vm783_vm15, %v773_v0, %v776_v11  ;;  %v609_v4 = vsub.s32 0, %v2621_v37 }
  0xcf   :  { %v791_v35 = vsel %vm783_vm15, %v770_v57, %v773_v0  ;;  %v793_v3 = vsel %vm785_vm1, %v776_v11, %v792_v13  ;;  %v796_v54 = vsel %vm786_vm13, %v782_v2, 1326507024  ;;  %v940_v30 = vsel %vm857_vm7, %v939_v8, %v938_v50 }
  0xd0   :  { %v788_v55 = vsel %vm786_vm13, %v776_v11, 2102212464  ;;  %v797_v47 = vsel %vm785_vm1, %v779_v1, %v796_v54  ;;  %v799_v31 = vshll.u32 %v759_v63, 8  ;;  %v943_v57 = vsel %vm2564_vm8, %v2327_v28, %v940_v30 }
  0xd1   :  { %v2049_v46 = vmin.u32 %v609_v4, %v2621_v37  ;;  %v630_v60 = vsel %vm545_vm11, %v629_v49, %v605_v10  ;;  %v798_v2 = vsel %vm784_vm0, %v795_v24, %v797_v47  ;;  %v2153_v12 = vpop.eup %2152  ;;  %2156 = vcosq.f32 %v943_v57 }
  0xd2   :  { %v794_v11 = vsel %vm784_vm0, %v791_v35, %v793_v3  ;;  %v2647_v41 = vmul.u32.u64.low %v799_v31, %v798_v2  ;;  %v2648_v1 = vmul.u32.u64.high %v799_v31, %v798_v2, %v2647_v41  ;;  %v2155_v51 = vpop.eup %2154  ;;  %v747_v50 = vxor.u32 2147483648, %v2153_v12 }
  0xd3   :  { %2158 = vsinq.f32 %v943_v57  ;;  %v611_v38 = vclz %v2049_v46  ;;  %v789_v63 = vsel %vm785_vm1, %v773_v0, %v788_v55  ;;  %v744_v23 = vxor.u32 2147483648, %v2155_v51 }
  0xd4   :  { %vm746_vm2 = vcmp.eq.s32.totalorder %v2572_v62, 2  ;;  %v2653_v10 = vand.u32 3, %v948_v29  ;;  %v632_v13 = vsel %vm2611_vm12, 0, %v630_v60  ;;  %vm742_vm3 = vcmp.lt.s32.totalorder %v2572_v62, 2 }
  0xd5   :  { %v748_v49 = vsel %vm746_vm2, %v747_v50, %v2155_v51  ;;  %v2050_v8 = vadd.s32 4294967294, %v611_v38  ;;  %v2657_v24 = vmul.u32.u64.low %v799_v31, %v794_v11  ;;  %v2658_v4 = vmul.u32.u64.high %v799_v31, %v794_v11, %v2657_v24 }
  0xd6   :  { %v745_v35 = vsel %vm743_vm14, %v2153_v12, %v744_v23  ;;  %v790_v0 = vsel %vm784_vm0, %v787_v52, %v789_v63  ;;  %v231_v29 = vand.u32 2147483647, %v2343_v53  ;;  %vm739_vm4 = vweird.f32 %v2323_v26 }
  0xd7   :  { %v749_v3 = vsel %vm742_vm3, %v745_v35, %v748_v49  ;;  %v599_v54 = vadd.s32 %v2552_v61, %v2549_v40  ;;  %vm2051_vm5 = vcmp.lt.s32.totalorder %v2050_v8, 0  ;;  %v2672_v47 = vadd.s32 3, %v632_v13 }
  0xd8   :  { %v2670_v30 = vsel %vm739_vm4, nan, %v749_v3  ;;  %v614_v55 = vsel %vm2051_vm5, 0, %v2050_v8  ;;  %vm808_vm6 = vc.u32 %v2648_v1, %v2657_v24  ;;  %vm954_vm7 = vcmp.eq.s32.totalorder %v2653_v10, 2 }
  0xd9   :  { %1044 = vmatprep.subr.mxu0 %v2670_v30  ;;  %v615_v20 = vsub.s32 32, %v614_v55  ;;  %v619_v62 = vsub.s32 4294967266, %v614_v55  ;;  %v806_v26 = vmul.u32 %v799_v31, %v790_v0  ;;  %v809_v52 = vadd.s32 1, %v2658_v4 }
  0xda   :  { %vm951_vm8 = vcmp.eq.s32.totalorder %v2653_v10, 0  ;;  %v616_v40 = vshll.u32 %v2621_v37, %v614_v55  ;;  %v238_v61 = vand.u32 8388607, %v231_v29  ;;  %v249_v57 = vshrl.u32 %v2227_v19, %v2489_v22 }
  0xdb   :  { %v252_v46 = vshrl.u32 %v2228_v36, %v2489_v22  ;;  %vm950_vm9 = vcmp.lt.s32.totalorder %v2653_v10, 2  ;;  %v617_v60 = vshrl.u32 %v599_v54, %v615_v20  ;;  %v620_v2 = vadd.s32 127, %v619_v62 }
  0xdc   :  { %v810_v31 = vsel %vm808_vm6, %v809_v52, %v2658_v4  ;;  %v255_v12 = vshrl.u32 %v2229_v39, %v2489_v22  ;;  %vm947_vm10 = vweird.f32 %v2327_v28  ;;  %v247_v11 = vshrl.u32 %v3551_v21, %v2489_v22 }
  0xdd   :  { %v811_v37 = vadd.s32 %v810_v31, %v806_v26  ;;  %v248_v41 = vshll.u32 %v3551_v21, %v2468_v5  ;;  %v251_v51 = vshll.u32 %v2227_v19, %v2468_v5  ;;  %v618_v50 = vor.u32 %v617_v60, %v616_v40 }
  0xde   :  { %v621_v38 = vshll.u32 %v620_v2, 23  ;;  %v254_v63 = vshll.u32 %v2228_v36, %v2468_v5  ;;  %v258_v23 = vshrl.u32 %v2230_v45, %v2489_v22  ;;  %v239_v49 = vor.u32 8388608, %v238_v61  ;;  %v2157_v35 = vpop.eup %2156 }
  0xdf   :  { %v812_v13 = vadd.s32 536870912, %v811_v37  ;;  %v250_v8 = vor.u32 %v249_v57, %v248_v41  ;;  %v261_v4 = vshrl.u32 %v3552_v43, %v2489_v22  ;;  %vm138_vm13 = vcmp.gt.s32.totalorder %v2466_v32, 0 }
  0xe0   :  { %v622_v0 = vor.u32 4788187, %v621_v38  ;;  %v253_v3 = vor.u32 %v252_v46, %v251_v51  ;;  %v256_v54 = vor.u32 %v255_v12, %v254_v63  ;;  %v257_v55 = vshll.u32 %v2229_v39, %v2468_v5  ;;  %v2159_v20 = vpop.eup %2158 }
  0xe1   :  { %v955_v62 = vxor.u32 2147483648, %v2157_v35  ;;  %v813_v26 = vshrl.u32 %v812_v13, 30  ;;  %v260_v52 = vshll.u32 %v2230_v45, %v2468_v5  ;;  %vm263_vm14 = vcmp.lt.s32.totalorder %v2484_v7, 1 }
  0xe2   :  { %v952_v40 = vxor.u32 2147483648, %v2159_v20  ;;  %v623_v61 = vand.u32 2147483647, %v622_v0  ;;  %v625_v22 = vcvt.s32.f32 %v618_v50  ;;  %v259_v57 = vor.u32 %v258_v23, %v257_v55 }
  0xe3   :  { %v956_v60 = vsel %vm954_vm7, %v955_v62, %v2159_v20  ;;  %v814_v46 = vshll.u32 %v813_v26, 30  ;;  %v262_v2 = vor.u32 %v261_v4, %v260_v52  ;;  %vm264_vm15 = vcmp.lt.s32.totalorder %v2484_v7, 2 }
  0xe4   :  { %v953_v31 = vsel %vm951_vm8, %v2157_v35, %v952_v40  ;;  %v626_v12 = vmul.f32 %v625_v22, %v623_v61  ;;  %vm265_vm0 = vcmp.lt.s32.totalorder %v2484_v7, 3  ;;  %vm266_vm1 = vcmp.lt.s32.totalorder %v2484_v7, 4 }
  0xe5   :  { %v957_v5 = vsel %vm950_vm9, %v953_v31, %v956_v60  ;;  %v2719_v41 = vsub.s32 %v811_v37, %v814_v46  ;;  %v267_v51 = vsel %vm263_vm14, %v247_v11, %v250_v8  ;;  %v271_v50 = vsel %vm263_vm14, %v250_v8, %v253_v3 }
  0xe6   :  { %v2727_v38 = vsel %vm947_vm10, nan, %v957_v5  ;;  %v627_v63 = vxor.u32 2147483648, %v626_v12  ;;  %v268_v23 = vsel %vm266_vm1, %v256_v54, 2102212464  ;;  %v272_v10 = vsel %vm266_vm1, %v259_v57, 920167782 }
  0xe7   :  { %1133 = vmatprep.subr.mxu1 %v2727_v38  ;;  %v817_v37 = vsub.s32 0, %v2719_v41  ;;  %v837_v13 = vsub.s32 4, %v813_v26  ;;  %v273_v11 = vsel %vm265_vm0, %v256_v54, %v272_v10  ;;  %v275_v28 = vsel %vm263_vm14, %v253_v3, %v256_v54 }
  0xe8   :  { %v628_v8 = vsel %vm545_vm11, %v627_v63, %v626_v12  ;;  %v274_v4 = vsel %vm264_vm15, %v271_v50, %v273_v11  ;;  %v276_v35 = vsel %vm266_vm1, %v262_v2, 1326507024  ;;  %v279_v0 = vshll.u32 %v239_v49, 8 }
  0xe9   :  { %v631_v55 = vsel %vm2611_vm12, %v2321_v25, %v628_v8  ;;  %v2057_v20 = vmin.u32 %v817_v37, %v2719_v41  ;;  %v269_v62 = vsel %vm265_vm0, %v253_v3, %v268_v23  ;;  %v277_v54 = vsel %vm265_vm0, %v259_v57, %v276_v35 }
  0xea   :  { %2160 = vcosq.f32 %v631_v55  ;;  %v278_v52 = vsel %vm264_vm15, %v275_v28, %v277_v54  ;;  %v2755_v40 = vmul.u32.u64.low %v279_v0, %v274_v4  ;;  %v2756_v61 = vmul.u32.u64.high %v279_v0, %v274_v4, %v2755_v40 }
  0xeb   :  { %v2762_v14 = vsel %vm138_vm13, %v2466_v32, 0  ;;  %2162 = vsinq.f32 %v631_v55  ;;  %vm753_vm11 = vcmp.lt.s32.totalorder %v2325_v27, 0  ;;  %v819_v49 = vclz %v2057_v20 }
  0xec   :  { %vm346_vm12 = vcmp.gt.s32.totalorder %v2474_v6, 0  ;;  %v838_v3 = vsel %vm753_vm11, %v837_v13, %v813_v26  ;;  %v2768_v22 = vmul.u32.u64.low %v279_v0, %v278_v52  ;;  %v2769_v57 = vmul.u32.u64.high %v279_v0, %v278_v52, %v2768_v22 }
  0xed   :  { %v2772_v60 = vand.u32 3, %v2672_v47  ;;  %v2058_v46 = vadd.s32 4294967294, %v819_v49  ;;  %v270_v32 = vsel %vm264_vm15, %v267_v51, %v269_v62  ;;  %v454_v2 = vsub.s32 32, %v2557_v44 }
  0xee   :  { %v3556_v31 = vand.u32 2147483647, %v2325_v27  ;;  %v289_v26 = vadd.s32 1, %v2756_v61  ;;  %v2785_v5 = vand.u32 31, %v2762_v14  ;;  %v2788_v47 = vsel %vm346_vm12, %v2474_v6, 0 }
  0xef   :  { %vm2059_vm3 = vcmp.lt.s32.totalorder %v2058_v46, 0  ;;  %v2793_v51 = vshrl.u32 %v2491_v48, 5  ;;  %v286_v63 = vmul.u32 %v279_v0, %v270_v32  ;;  %vm288_vm4 = vc.u32 %v2769_v57, %v2755_v40 }
  0xf0   :  { %vm2779_vm2 = vcmp.le.f32.partialorder %v3556_v31, 0.7853982  ;;  %v822_v50 = vsel %vm2059_vm3, 0, %v2058_v46  ;;  %vm642_vm5 = vcmp.eq.s32.totalorder %v2772_v60, 2  ;;  %v807_v23 = vadd.s32 %v2657_v24, %v2648_v1 }
  0xf1   :  { %v840_v7 = vsel %vm2779_vm2, 0, %v838_v3  ;;  %v823_v10 = vsub.s32 32, %v822_v50  ;;  %v827_v6 = vsub.s32 4294967266, %v822_v50  ;;  %v290_v37 = vsel %vm288_vm4, %v289_v26, %v2756_v61 }
  0xf2   :  { %vm639_vm6 = vcmp.eq.s32.totalorder %v2772_v60, 0  ;;  %v2802_v13 = vadd.s32 3, %v840_v7  ;;  %v291_v48 = vadd.s32 %v290_v37, %v286_v63  ;;  %v439_v11 = vand.u32 2147483647, %v2349_v59 }
  0xf3   :  { %v457_v28 = vshrl.u32 %v2227_v19, %v454_v2  ;;  %vm638_vm7 = vcmp.lt.s32.totalorder %v2772_v60, 2  ;;  %v824_v8 = vshll.u32 %v2719_v41, %v822_v50  ;;  %v825_v4 = vshrl.u32 %v807_v23, %v823_v10 }
  0xf4   :  { %v828_v35 = vadd.s32 127, %v827_v6  ;;  %v460_v1 = vshrl.u32 %v2228_v36, %v454_v2  ;;  %vm635_vm8 = vweird.f32 %v2321_v25  ;;  %v292_v24 = vadd.s32 536870912, %v291_v48 }
  0xf5   :  { %v455_v0 = vshrl.u32 %v3551_v21, %v454_v2  ;;  %v456_v55 = vshll.u32 %v3551_v21, %v2557_v44  ;;  %v463_v20 = vshrl.u32 %v2229_v39, %v454_v2  ;;  %v826_v62 = vor.u32 %v825_v4, %v824_v8 }
  0xf6   :  { %v829_v54 = vshll.u32 %v828_v35, 23  ;;  %v459_v52 = vshll.u32 %v2227_v19, %v2557_v44  ;;  %v466_v41 = vshrl.u32 %v2230_v45, %v454_v2  ;;  %v293_v61 = vshrl.u32 %v292_v24, 30 }
  0xf7   :  { %v446_v49 = vand.u32 8388607, %v439_v11  ;;  %v462_v3 = vshll.u32 %v2228_v36, %v2557_v44  ;;  %v469_v22 = vshrl.u32 %v3552_v43, %v454_v2  ;;  %v2161_v46 = vpop.eup %2160  ;;  %v458_v31 = vor.u32 %v457_v28, %v456_v55 }
  0xf8   :  { %v830_v32 = vor.u32 4788187, %v829_v54  ;;  %v461_v26 = vor.u32 %v460_v1, %v459_v52  ;;  %v465_v7 = vshll.u32 %v2229_v39, %v2557_v44  ;;  %v2163_v50 = vpop.eup %2162  ;;  %v643_v63 = vxor.u32 2147483648, %v2161_v46 }
  0xf9   :  { %v294_v23 = vshll.u32 %v293_v61, 30  ;;  %v464_v10 = vor.u32 %v463_v20, %v462_v3  ;;  %v468_v6 = vshll.u32 %v2230_v45, %v2557_v44  ;;  %v640_v37 = vxor.u32 2147483648, %v2163_v50  ;;  %v2838_v44 = vld [vmem:[%s3530_s3 + $0x10] sm:$0xff]  ;;  %v2858_v3 = vld [vmem:[%s3530_s3 + $0x8] sm:$0xff] }
  0xfa   :  { %v831_v8 = vand.u32 2147483647, %v830_v32  ;;  %v833_v4 = vcvt.s32.f32 %v826_v62  ;;  %v467_v35 = vor.u32 %v466_v41, %v465_v7  ;;  %v644_v2 = vsel %vm642_vm5, %v643_v63, %v2163_v50  ;;  %979 = vperm.xlu1 %2139, %v2838_v44  }
  0xfb   :  { %vm233_vm9 = vcmp.lt.s32.totalorder %v2343_v53, 0  ;;  %v2829_v28 = vsub.s32 %v291_v48, %v294_v23  ;;  %v447_v1 = vor.u32 8388608, %v446_v49  ;;  %v470_v24 = vor.u32 %v469_v22, %v468_v6 }
  0xfc   :  { %v641_v55 = vsel %vm639_vm6, %v2161_v46, %v640_v37  ;;  %v834_v20 = vmul.f32 %v833_v4, %v831_v8  ;;  %vm471_vm10 = vcmp.lt.s32.totalorder %v2793_v51, 1  ;;  %vm474_vm13 = vcmp.lt.s32.totalorder %v2793_v51, 4 }
  0xfd   :  { %v645_v62 = vsel %vm638_vm7, %v641_v55, %v644_v2  ;;  %v297_v48 = vsub.s32 0, %v2829_v28  ;;  %vm473_vm14 = vcmp.lt.s32.totalorder %v2793_v51, 3  ;;  %v476_v54 = vsel %vm474_vm13, %v464_v10, 2102212464 }
  0xfe   :  { %v2849_v52 = vsel %vm635_vm8, nan, %v645_v62  ;;  %v835_v41 = vxor.u32 2147483648, %v834_v20  ;;  %v479_v49 = vsel %vm471_vm10, %v458_v31, %v461_v26  ;;  %v480_v60 = vsel %vm474_vm13, %v467_v35, 920167782  ;;  %974 = vperm.xlu1 %2139, %v2858_v3  }
  0xff   :  { %1045 = vmatpush1.msra.mxu0 %v2849_v52  ;;  %v2037_v22 = vmin.u32 %v297_v48, %v2829_v28  ;;  %v481_v25 = vsel %vm473_vm14, %v464_v10, %v480_v60  ;;  %v483_v46 = vsel %vm471_vm10, %v461_v26, %v464_v10  ;;  %v484_v32 = vsel %vm474_vm13, %v470_v24, 1326507024 }
 0x100   :  { %v836_v7 = vsel %vm753_vm11, %v835_v41, %v834_v20  ;;  %v317_v50 = vsub.s32 4, %v293_v61  ;;  %vm472_vm15 = vcmp.lt.s32.totalorder %v2793_v51, 2  ;;  %v485_v63 = vsel %vm473_vm14, %v467_v35, %v484_v32 }
 0x101   :  { %v839_v23 = vsel %vm2779_vm2, %v2325_v27, %v836_v7  ;;  %v299_v6 = vclz %v2037_v22  ;;  %v482_v10 = vsel %vm472_vm15, %v479_v49, %v481_v25  ;;  %v487_v37 = vshll.u32 %v447_v1, 8 }
 0x102   :  { %2164 = vcosq.f32 %v839_v23  ;;  %v475_v8 = vsel %vm471_vm10, %v455_v0, %v458_v31  ;;  %v477_v4 = vsel %vm473_vm14, %v461_v26, %v476_v54  ;;  %v486_v35 = vsel %vm472_vm15, %v483_v46, %v485_v63 }
 0x103   :  { %2166 = vsinq.f32 %v839_v23  ;;  %v2038_v12 = vadd.s32 4294967294, %v299_v6  ;;  %v2885_v2 = vmul.u32.u64.low %v487_v37, %v486_v35  ;;  %v2886_v24 = vmul.u32.u64.high %v487_v37, %v486_v35, %v2885_v2 }
 0x104   :  { %v318_v1 = vsel %vm233_vm9, %v317_v50, %v293_v61  ;;  %v2890_v55 = vmul.u32.u64.low %v487_v37, %v482_v10  ;;  %v2891_v20 = vmul.u32.u64.high %v487_v37, %v482_v10, %v2890_v55  ;;  %v127_v0 = vand.u32 2147483647, %v2345_v56 }
 0x105   :  { %v2896_v31 = vsub.s32 32, %v2785_v5  ;;  %v2899_v26 = vand.u32 3, %v2802_v13  ;;  %vm2039_vm0 = vcmp.lt.s32.totalorder %v2038_v12, 0  ;;  %v478_v62 = vsel %vm472_vm15, %v475_v8, %v477_v4 }
 0x106   :  { %v3559_v48 = vmov 1   ;;  %v2905_v61 = vshrl.u32 %v2762_v14, 5  ;;  %v2908_v54 = vand.u32 31, %v2788_v47  ;;  %vm2912_vm1 = vcmp.le.f32.partialorder %v231_v29, 0.7853982 }
 0x107   :  { %2140 = vset.pattern.permute.xlu1 %v3559_v48  ;;  %v302_v13 = vsel %vm2039_vm0, 0, %v2038_v12  ;;  %v287_v51 = vadd.s32 %v2755_v40, %v2769_v57  ;;  %v320_v14 = vsel %vm2912_vm1, 0, %v318_v1  ;;  %v494_v22 = vmul.u32 %v487_v37, %v478_v62 }
 0x108   :  { %1203 = vperm.xlu1 %2140, %v2838_v44   ;;  %v303_v49 = vsub.s32 32, %v302_v13  ;;  %v307_v60 = vsub.s32 4294967266, %v302_v13  ;;  %vm496_vm11 = vc.u32 %v2886_v24, %v2890_v55  ;;  %v497_v29 = vadd.s32 1, %v2891_v20 }
 0x109   :  { %v2926_v25 = vand.u32 8388607, %v127_v0  ;;  %vm850_vm12 = vcmp.eq.s32.totalorder %v2899_v26, 2  ;;  %v304_v46 = vshll.u32 %v2829_v28, %v302_v13  ;;  %v145_v32 = vshrl.u32 %v2227_v19, %v2896_v31 }
 0x10a   :  { %v305_v40 = vshrl.u32 %v287_v51, %v303_v49  ;;  %v308_v57 = vadd.s32 127, %v307_v60  ;;  %vm847_vm2 = vcmp.eq.s32.totalorder %v2899_v26, 0  ;;  %v2933_v7 = vadd.s32 3, %v320_v14 }
 0x10b   :  { %v498_v50 = vsel %vm496_vm11, %v497_v29, %v2891_v20  ;;  %v148_v63 = vshrl.u32 %v2228_v36, %v2896_v31  ;;  %v151_v23 = vshrl.u32 %v2229_v39, %v2896_v31  ;;  %vm846_vm3 = vcmp.lt.s32.totalorder %v2899_v26, 2 }
 0x10c   :  { %1199 = vperm.xlu1 %2140, %v2858_v3   ;;  %v306_v28 = vor.u32 %v305_v40, %v304_v46  ;;  %v309_v6 = vshll.u32 %v308_v57, 23  ;;  %v499_v10 = vadd.s32 %v498_v50, %v494_v22  ;;  %v144_v37 = vshll.u32 %v3551_v21, %v2785_v5 }
 0x10d   :  { %vm843_vm4 = vweird.f32 %v2325_v27  ;;  %v147_v8 = vshll.u32 %v2227_v19, %v2785_v5  ;;  %v150_v4 = vshll.u32 %v2228_v36, %v2785_v5  ;;  %v153_v35 = vshll.u32 %v2229_v39, %v2785_v5 }
 0x10e   :  { %v154_v12 = vshrl.u32 %v2230_v45, %v2896_v31  ;;  %v310_v2 = vor.u32 4788187, %v309_v6  ;;  %v500_v1 = vadd.s32 536870912, %v499_v10  ;;  %v135_v20 = vor.u32 8388608, %v2926_v25 }
 0x10f   :  { %v146_v62 = vor.u32 %v145_v32, %v144_v37  ;;  %v149_v13 = vor.u32 %v148_v63, %v147_v8  ;;  %v152_v51 = vor.u32 %v151_v23, %v150_v4  ;;  %v157_v60 = vshrl.u32 %v3552_v43, %v2896_v31  ;;  %v2165_v14 = vpop.eup %2164 }
 0x110   :  { %v155_v49 = vor.u32 %v154_v12, %v153_v35  ;;  %v311_v22 = vand.u32 2147483647, %v310_v2  ;;  %v313_v29 = vcvt.s32.f32 %v306_v28  ;;  %v2956_v46 = vshrl.u32 %v500_v1, 30  ;;  %v2167_v40 = vpop.eup %2166 }
 0x111   :  { %vm162_vm5 = vcmp.lt.s32.totalorder %v2905_v61, 4  ;;  %v851_v57 = vxor.u32 2147483648, %v2165_v14  ;;  %v156_v50 = vshll.u32 %v2230_v45, %v2785_v5  ;;  %vm159_vm6 = vcmp.lt.s32.totalorder %v2905_v61, 1 }
 0x112   :  { %v168_v25 = vsel %vm162_vm5, %v155_v49, 920167782  ;;  %v848_v32 = vxor.u32 2147483648, %v2167_v40  ;;  %v314_v63 = vmul.f32 %v313_v29, %v311_v22  ;;  %v502_v23 = vshll.u32 %v2956_v46, 30 }
 0x113   :  { %vm161_vm7 = vcmp.lt.s32.totalorder %v2905_v61, 3  ;;  %v852_v28 = vsel %vm850_vm12, %v851_v57, %v2167_v40  ;;  %v158_v6 = vor.u32 %v157_v60, %v156_v50  ;;  %v167_v37 = vsel %vm159_vm6, %v146_v62, %v149_v13 }
 0x114   :  { %v169_v5 = vsel %vm161_vm7, %v152_v51, %v168_v25  ;;  %v849_v8 = vsel %vm847_vm2, %v2165_v14, %v848_v32  ;;  %v315_v4 = vxor.u32 2147483648, %v314_v63  ;;  %v503_v35 = vsub.s32 %v499_v10, %v502_v23 }
 0x115   :  { %v143_v12 = vshrl.u32 %v3551_v21, %v2896_v31  ;;  %v853_v2 = vsel %vm846_vm3, %v849_v8, %v852_v28  ;;  %vm160_vm8 = vcmp.lt.s32.totalorder %v2905_v61, 2  ;;  %v164_v1 = vsel %vm162_vm5, %v152_v51, 2102212464 }
 0x116   :  { %v171_v60 = vsel %vm159_vm6, %v149_v13, %v152_v51  ;;  %v2985_v22 = vsel %vm843_vm4, nan, %v853_v2  ;;  %v316_v10 = vsel %vm233_vm9, %v315_v4, %v314_v63  ;;  %v505_v14 = vsub.s32 0, %v503_v35 }
 0x117   :  { %v170_v31 = vsel %vm160_vm8, %v167_v37, %v169_v5  ;;  %1134 = vmatpush1.msra.mxu1 %v2985_v22  ;;  %v319_v26 = vsel %vm2912_vm1, %v2343_v53, %v316_v10  ;;  %v163_v51 = vsel %vm159_vm6, %v143_v12, %v146_v62  ;;  %v172_v27 = vsel %vm162_vm5, %v158_v6, 1326507024 }
 0x118   :  { %v175_v29 = vshll.u32 %v135_v20, 8  ;;  %2168 = vcosq.f32 %v319_v26  ;;  %v2045_v40 = vmin.u32 %v505_v14, %v503_v35  ;;  %v165_v57 = vsel %vm161_vm7, %v149_v13, %v164_v1 }
 0x119   :  { %v173_v50 = vsel %vm161_vm7, %v155_v49, %v172_v27  ;;  %2170 = vsinq.f32 %v319_v26  ;;  %v3010_v63 = vand.u32 3, %v2933_v7  ;;  %v166_v13 = vsel %vm160_vm8, %v163_v51, %v165_v57 }
 0x11a   :  { %v174_v41 = vsel %vm160_vm8, %v171_v60, %v173_v50  ;;  %v3005_v25 = vmul.u32.u64.low %v175_v29, %v170_v31  ;;  %v3006_v32 = vmul.u32.u64.high %v175_v29, %v170_v31, %v3005_v25  ;;  %v507_v62 = vclz %v2045_v40 }
 0x11b   :  { %v3012_v20 = vmul.u32.u64.low %v175_v29, %v174_v41  ;;  %v3013_v23 = vmul.u32.u64.high %v175_v29, %v174_v41, %v3012_v20  ;;  %v2232_v49 = vmov 0.0   ;;  %v350_v6 = vsub.s32 32, %v2908_v54 }
 0x11c   :  { %v2046_v28 = vadd.s32 4294967294, %v507_v62  ;;  %1080 = vmatprep.mubr.f32.mxu0 %v2232_v49  ;;  %1169 = vmatprep.mubr.f32.mxu1 %v2232_v49  ;;  %v185_v37 = vadd.s32 1, %v3006_v32  ;;  %v3022_v5 = vshrl.u32 %v2788_v47, 5  ;;  %v495_v7 = vadd.s32 %v2890_v55, %v2886_v24 }
 0x11d   :  { %vm330_vm10 = vcmp.eq.s32.totalorder %v3010_v63, 2  ;;  %v525_v8 = vsub.s32 4, %v2956_v46  ;;  %v182_v4 = vmul.u32 %v175_v29, %v166_v13  ;;  %vm184_vm13 = vc.u32 %v3013_v23, %v3005_v25 }
 0x11e   :  { %vm2047_vm9 = vcmp.lt.s32.totalorder %v2046_v28, 0  ;;  %vm327_vm14 = vcmp.eq.s32.totalorder %v3010_v63, 0  ;;  %v186_v47 = vsel %vm184_vm13, %v185_v37, %v3006_v32  ;;  %v335_v1 = vand.u32 2147483647, %v2347_v58 }
 0x11f   :  { %v510_v61 = vsel %vm2047_vm9, 0, %v2046_v28  ;;  %vm326_vm15 = vcmp.lt.s32.totalorder %v3010_v63, 2  ;;  %v187_v24 = vadd.s32 %v186_v47, %v182_v4  ;;  %v3035_v55 = vshrl.u32 %v3551_v21, %v350_v6 }
 0x120   :  { %v511_v12 = vsub.s32 32, %v510_v61  ;;  %v515_v2 = vsub.s32 4294967266, %v510_v61  ;;  %v352_v60 = vshll.u32 %v3551_v21, %v2908_v54  ;;  %v353_v10 = vshrl.u32 %v2227_v19, %v350_v6 }
 0x121   :  { %vm323_vm0 = vweird.f32 %v2343_v53  ;;  %v512_v14 = vshll.u32 %v503_v35, %v510_v61  ;;  %v356_v51 = vshrl.u32 %v2228_v36, %v350_v6  ;;  %v188_v27 = vadd.s32 536870912, %v187_v24 }
 0x122   :  { %v513_v31 = vshrl.u32 %v495_v7, %v511_v12  ;;  %v516_v26 = vadd.s32 127, %v515_v2  ;;  %v355_v29 = vshll.u32 %v2227_v19, %v2908_v54  ;;  %v359_v40 = vshrl.u32 %v2229_v39, %v350_v6  ;;  %v2201_v7 = vld [vmem:[%s3530_s3] sm:$0xff] }
 0x123   :  { %v362_v57 = vshrl.u32 %v2230_v45, %v350_v6  ;;  %v342_v21 = vand.u32 8388607, %v335_v1  ;;  %v365_v32 = vshrl.u32 %v3552_v43, %v350_v6  ;;  %vm441_vm1 = vcmp.lt.s32.totalorder %v2349_v59, 0 }
 0x124   :  { %v514_v50 = vor.u32 %v513_v31, %v512_v14  ;;  %v517_v41 = vshll.u32 %v516_v26, 23  ;;  %v3050_v62 = vshrl.u32 %v188_v27, 30  ;;  %v354_v20 = vor.u32 %v353_v10, %v352_v60 }
 0x125   :  { %v2169_v35 = vpop.eup %2168  ;;  %v358_v19 = vshll.u32 %v2228_v36, %v2908_v54  ;;  %v361_v28 = vshll.u32 %v2229_v39, %v2908_v54  ;;  %vm3058_vm11 = vcmp.le.f32.partialorder %v439_v11, 0.7853982  ;;  %v357_v6 = vor.u32 %v356_v51, %v355_v29 }
 0x126   :  { %v2171_v13 = vpop.eup %2170  ;;  %v331_v37 = vxor.u32 2147483648, %v2169_v35  ;;  %v518_v43 = vor.u32 4788187, %v517_v41  ;;  %v364_v61 = vshll.u32 %v2230_v45, %v2908_v54  ;;  %v190_v12 = vshll.u32 %v3050_v62, 30 }
 0x127   :  { %v328_v4 = vxor.u32 2147483648, %v2171_v13  ;;  %v360_v36 = vor.u32 %v359_v40, %v358_v19  ;;  %v363_v2 = vor.u32 %v362_v57, %v361_v28  ;;  %v521_v60 = vcvt.s32.f32 %v514_v50 }
 0x128   :  { %v332_v39 = vsel %vm330_vm10, %v331_v37, %v2171_v13  ;;  %v519_v47 = vand.u32 2147483647, %v518_v43  ;;  %v366_v10 = vor.u32 %v365_v32, %v364_v61  ;;  %v191_v14 = vsub.s32 %v187_v24, %v190_v12 }
 0x129   :  { %v329_v11 = vsel %vm327_vm14, %v2169_v35, %v328_v4  ;;  %v343_v31 = vor.u32 8388608, %v342_v21  ;;  %vm367_vm12 = vcmp.lt.s32.totalorder %v3022_v5, 1  ;;  %vm368_vm2 = vcmp.lt.s32.totalorder %v3022_v5, 2 }
 0x12a   :  { %v333_v45 = vsel %vm326_vm15, %v329_v11, %v332_v39  ;;  %v522_v54 = vmul.f32 %v521_v60, %v519_v47  ;;  %vm369_vm3 = vcmp.lt.s32.totalorder %v3022_v5, 3  ;;  %v193_v51 = vsub.s32 0, %v191_v14  ;;  %v2200_v39 = vld [vmem:[%s3530_s3 + $0x18] sm:$0xff] }
 0x12b   :  { %v3076_v26 = vsel %vm323_vm0, nan, %v333_v45  ;;  %vm370_vm4 = vcmp.lt.s32.totalorder %v3022_v5, 4  ;;  %v375_v24 = vsel %vm367_vm12, %v354_v20, %v357_v6  ;;  %v379_v29 = vsel %vm367_vm12, %v357_v6, %v360_v36 }
 0x12c   :  { %1046 = vmatprep.subr.mxu0 %v3076_v26  ;;  %v523_v27 = vxor.u32 2147483648, %v522_v54  ;;  %v376_v63 = vsel %vm370_vm4, %v363_v2, 920167782  ;;  %v380_v40 = vsel %vm370_vm4, %v366_v10, 1326507024  ;;  %v2033_v57 = vmin.u32 %v193_v51, %v191_v14 }
 0x12d   :  { %v372_v50 = vsel %vm370_vm4, %v360_v36, 2102212464  ;;  %v377_v53 = vsel %vm369_vm3, %v360_v36, %v376_v63  ;;  %v381_v41 = vsel %vm369_vm3, %v363_v2, %v380_v40  ;;  %v383_v19 = vshll.u32 %v343_v31, 8 }
 0x12e   :  { %v524_v21 = vsel %vm441_vm1, %v523_v27, %v522_v54  ;;  %v378_v32 = vsel %vm368_vm2, %v375_v24, %v377_v53  ;;  %v382_v35 = vsel %vm368_vm2, %v379_v29, %v381_v41  ;;  %v526_v28 = vsel %vm441_vm1, %v525_v8, %v2956_v46 }
 0x12f   :  { %v527_v13 = vsel %vm3058_vm11, %v2349_v59, %v524_v21  ;;  %v195_v37 = vclz %v2033_v57  ;;  %v371_v43 = vsel %vm367_vm12, %v3035_v55, %v354_v20  ;;  %v373_v61 = vsel %vm369_vm3, %v357_v6, %v372_v50 }
 0x130   :  { %2172 = vcosq.f32 %v527_v13  ;;  %v3107_v4 = vmul.u32.u64.low %v383_v19, %v382_v35  ;;  %v3108_v12 = vmul.u32.u64.high %v383_v19, %v382_v35, %v3107_v4  ;;  %v528_v8 = vsel %vm3058_vm11, 0, %v526_v28 }
 0x131   :  { %2174 = vsinq.f32 %v527_v13  ;;  %v2034_v36 = vadd.s32 4294967294, %v195_v37  ;;  %v3110_v2 = vmul.u32.u64.low %v383_v19, %v378_v32  ;;  %v3111_v46 = vmul.u32.u64.high %v383_v19, %v378_v32, %v3110_v2 }
 0x132   :  { %v374_v55 = vsel %vm368_vm2, %v371_v43, %v373_v61  ;;  %v2233_v20 = vmov 2   ;;  %v183_v5 = vadd.s32 %v3005_v25, %v3013_v23  ;;  %v532_v11 = vadd.s32 3, %v528_v8 }
 0x133   :  { %vm2035_vm5 = vcmp.lt.s32.totalorder %v2034_v36, 0  ;;  %2142 = vset.pattern.permute.xlu1 %v2233_v20  ;;  %2143 = vset.pattern.permute.xlu0 %v2233_v20  ;;  %vm392_vm6 = vc.u32 %v3108_v12, %v3110_v2  ;;  %v393_v10 = vadd.s32 1, %v3111_v46  ;;  %v390_v31 = vmul.u32 %v383_v19, %v374_v55 }
 0x134   :  { %v198_v6 = vsel %vm2035_vm5, 0, %v2034_v36  ;;  %1255 = vperm.xlu1 %2142, %v2200_v39   ;;  %1243 = vperm.xlu0 %2143, %v2201_v7   ;;  %v3564_v63 = vmov 0   ;;  %v533_v25 = vand.u32 3, %v532_v11  ;;  %vm531_vm9 = vweird.f32 %v2349_v59 }
 0x135   :  { %v199_v47 = vsub.s32 32, %v198_v6  ;;  %v203_v60 = vsub.s32 4294967266, %v198_v6  ;;  %v200_v45 = vshll.u32 %v191_v14, %v198_v6  ;;  %v394_v24 = vsel %vm392_vm6, %v393_v10, %v3111_v46 }
 0x136   :  { %v395_v27 = vadd.s32 %v394_v24, %v390_v31  ;;  %vm538_vm7 = vcmp.eq.s32.totalorder %v533_v25, 2  ;;  %vm535_vm8 = vcmp.eq.s32.totalorder %v533_v25, 0  ;;  %vm534_vm10 = vcmp.lt.s32.totalorder %v533_v25, 2 }
 0x137   :  { %v201_v54 = vshrl.u32 %v183_v5, %v199_v47  ;;  %v204_v51 = vadd.s32 127, %v203_v60  ;;  %vm129_vm13 = vcmp.lt.s32.totalorder %v2345_v56, 0  ;;  %v213_v61 = vsub.s32 4, %v3050_v62 }
 0x138   :  { %1251 = vperm.xlu1 %2142, %v2838_v44   ;;  %2146 = vset.pattern.permute.xlu0 %v3564_v63  ;;  %v396_v57 = vadd.s32 536870912, %v395_v27  ;;  %vm128_vm14 = vcmp.le.f32.partialorder %v127_v0, 0.7853982  ;;  %v391_v60 = vadd.s32 %v3110_v2, %v3108_v12  ;;  %vm219_vm12 = vweird.f32 %v2345_v56 }
 0x139   :  { %v202_v29 = vor.u32 %v201_v54, %v200_v45  ;;  %v205_v40 = vshll.u32 %v204_v51, 23  ;;  %v214_v55 = vsel %vm129_vm13, %v213_v61, %v3050_v62  ;;  %vm1003_vm2 = vcmask 130048  }
 0x13a   :  { %v3134_v50 = vshrl.u32 %v396_v57, 30  ;;  %v216_v7 = vsel %vm128_vm14, 0, %v214_v55  ;;  %vm337_vm3 = vcmp.lt.s32.totalorder %v2347_v58, 0  ;;  %vm3159_vm4 = vcmp.le.f32.partialorder %v335_v1, 0.7853982  ;;  %v964_v1 = vld [vmem:[%s3529_s2 + $0x8] sm:$0xff] }
 0x13b   :  { %v206_v23 = vor.u32 4788187, %v205_v40  ;;  %v209_v41 = vcvt.s32.f32 %v202_v29  ;;  %v220_v47 = vadd.s32 3, %v216_v7  ;;  %v1293_v55 = vld [vmem:[%s3533_s6 + $0x18] sm:$0xff]  ;;  %v1291_v7 = vld [vmem:[%s3533_s6 + $0x8] sm:$0xff] }
 0x13c   :  { %1247 = vperm.xlu1 %2142, %v2858_v3   ;;  %v398_v35 = vshll.u32 %v3134_v50, 30 }
 0x13d   :  { %v2173_v53 = vpop.eup %2172  ;;  %v207_v14 = vand.u32 2147483647, %v206_v23  ;;  %v221_v54 = vand.u32 3, %v220_v47 }
 0x13e   :  { %v2175_v21 = vpop.eup %2174  ;;  %v539_v32 = vxor.u32 2147483648, %v2173_v53  ;;  %v399_v13 = vsub.s32 %v395_v27, %v398_v35  ;;  %v421_v35 = vsub.s32 4, %v3134_v50 }
 0x13f   :  { %v536_v19 = vxor.u32 2147483648, %v2175_v21  ;;  %v210_v44 = vmul.f32 %v209_v41, %v207_v14  ;;  %vm226_vm0 = vcmp.eq.s32.totalorder %v221_v54, 2  ;;  %vm223_vm1 = vcmp.eq.s32.totalorder %v221_v54, 0  ;;  %v963_v41 = vld [vmem:[%s3529_s2] sm:$0xff] }
 0x140   :  { %v540_v28 = vsel %vm538_vm7, %v539_v32, %v2175_v21  ;;  %2144 = vset.pattern.permute.xlu1 %v3564_v63  ;;  %v401_v4 = vsub.s32 0, %v399_v13  ;;  %vm222_vm11 = vcmp.lt.s32.totalorder %v221_v54, 2 }
 0x141   :  { %v537_v37 = vsel %vm535_vm8, %v2173_v53, %v536_v19  ;;  %v211_v3 = vxor.u32 2147483648, %v210_v44  ;;  %vm427_vm8 = vweird.f32 %v2347_v58  ;;  %1700 = vperm.xlu1 %2144, %v1293_v55  }
 0x142   :  { %v541_v43 = vsel %vm534_vm10, %v537_v37, %v540_v28  ;;  %v2041_v59 = vmin.u32 %v401_v4, %v399_v13  ;;  %v422_v28 = vsel %vm337_vm3, %v421_v35, %v3134_v50 }
 0x143   :  { %v3142_v36 = vsel %vm531_vm9, nan, %v541_v43  ;;  %v212_v46 = vsel %vm129_vm13, %v211_v3, %v210_v44  ;;  %vm1492_vm9 = vcmask 261120  }
 0x144   :  { %1135 = vmatprep.subr.mxu1 %v3142_v36  ;;  %v215_v8 = vsel %vm128_vm14, %v2345_v56, %v212_v46  ;;  %v403_v6 = vclz %v2041_v59 }
 0x145   :  { %2176 = vcosq.f32 %v215_v8 }
 0x146   :  { %2178 = vsinq.f32 %v215_v8  ;;  %v2042_v39 = vadd.s32 4294967294, %v403_v6  ;;  %v1290_v6 = vld [vmem:[%s3533_s6] sm:$0xff] }
 0x147   :  { %1685 = vperm.xlu0 %2146, %v1290_v6  }
 0x148   :  { %vm2043_vm15 = vcmp.lt.s32.totalorder %v2042_v39, 0 }
 0x149   :  { %v406_v5 = vsel %vm2043_vm15, 0, %v2042_v39  ;;  %v1292_v39 = vld [vmem:[%s3533_s6 + $0x10] sm:$0xff] }
 0x14a   :  { %v407_v0 = vsub.s32 32, %v406_v5  ;;  %v411_v10 = vsub.s32 4294967266, %v406_v5  ;;  %v408_v11 = vshll.u32 %v399_v13, %v406_v5  ;;  %1695 = vperm.xlu1 %2144, %v1292_v39  }
 0x14b   :  { %2147 = vset.pattern.permute.xlu0 %v3559_v48 }
 0x14c   :  { %v409_v31 = vshrl.u32 %v391_v60, %v407_v0  ;;  %v412_v45 = vadd.s32 127, %v411_v10  ;;  %1748 = vperm.xlu0 %2147, %v1293_v55  }
 0x14e   :  { %v410_v51 = vor.u32 %v409_v31, %v408_v11  ;;  %v413_v24 = vshll.u32 %v412_v45, 23  ;;  %1690 = vperm.xlu1 %2144, %v1291_v7  }
 0x150   :  { %v414_v62 = vor.u32 4788187, %v413_v24  ;;  %v417_v23 = vcvt.s32.f32 %v410_v51  ;;  %1736 = vperm.xlu0 %2147, %v1290_v6  }
 0x152   :  { %v2177_v27 = vpop.eup %2176  ;;  %v415_v25 = vand.u32 2147483647, %v414_v62  ;;  %2145 = vset.pattern.permute.xlu1 %v3559_v48  ;;  %v3253_v48 = vpop.permute.xlu0 %984 }
 0x153   :  { %v2179_v29 = vpop.eup %2178  ;;  %v227_v40 = vxor.u32 2147483648, %v2177_v27  ;;  %1744 = vperm.xlu1 %2145, %v1292_v39  }
 0x154   :  { %v224_v57 = vxor.u32 2147483648, %v2179_v29  ;;  %v418_v2 = vmul.f32 %v417_v23, %v415_v25  ;;  %2149 = vset.pattern.permute.xlu0 %v2233_v20  ;;  %v999_v23 = vmul.f32 %v3253_v48, %v2333_v33 }
 0x155   :  { %v228_v53 = vsel %vm226_vm0, %v227_v40, %v2179_v29  ;;  %1784 = vperm.xlu0 %2149, %v1290_v6  }
 0x156   :  { %v225_v12 = vsel %vm223_vm1, %v2177_v27, %v224_v57  ;;  %v419_v32 = vxor.u32 2147483648, %v418_v2  ;;  %v3257_v31 = vpop.permute.xlu0 %969 }
 0x157   :  { %v229_v14 = vsel %vm222_vm11, %v225_v12, %v228_v53  ;;  %1740 = vperm.xlu1 %2145, %v1291_v7   ;;  %v987_v27 = vmul.f32 %v3257_v31, %v2333_v33  ;;  %v988_v62 = vmul.f32 %v3257_v31, %v2335_v34 }
 0x158   :  { %v230_v21 = vsel %vm219_vm12, nan, %v229_v14  ;;  %v420_v56 = vsel %vm337_vm3, %v419_v32, %v418_v2 }
 0x159   :  { %1047 = vmatpush1.msra.mxu0 %v230_v21  ;;  %v423_v44 = vsel %vm3159_vm4, %v2347_v58, %v420_v56  ;;  %v1298_v58 = vld [vmem:[%s3532_s5] sm:$0xff]  ;;  %2151 = vset.pattern.permute.xlu0 %v3564_v63 }
 0x15a   :  { %2064 = vmatmul.mubr.msk.f32.vlgmr.msra.gmra.mxu0 %vm1003_vm2, %v963_v41  ;;  %1342 = vmatprep.subr.mxu0 %v2670_v30  ;;  %2180 = vcosq.f32 %v423_v44  ;;  %v965_v30 = vld [vmem:[%s3529_s2 + $0x10] sm:$0xff]  ;;  %v3259_v54 = vpop.permute.xlu0 %1207 }
 0x15b   :  { %1343 = vmatpush1.msra.mxu0 %v2849_v52  ;;  %1086 = vmatprep.mubr.f32.mxu0 %v2232_v49  ;;  %2182 = vsinq.f32 %v423_v44  ;;  %v424_v52 = vsel %vm3159_vm4, 0, %v422_v28  ;;  %v1222_v53 = vmul.f32 %v3259_v54, %v2309_v15 }
 0x15c   :  { %1344 = vmatprep.subr.mxu0 %v3076_v26  ;;  %v428_v13 = vadd.s32 3, %v424_v52  ;;  %v966_v26 = vld [vmem:[%s3529_s2 + $0x18] sm:$0xff]  ;;  %2148 = vset.pattern.permute.xlu1 %v2233_v20 }
 0x15d   :  { %1345 = vmatpush1.msra.mxu0 %v230_v21  ;;  %1796 = vperm.xlu1 %2148, %v1293_v55   ;;  %v1000_v21 = vmul.f32 %v3253_v48, %v2335_v34 }
 0x15e   :  { %2065 = vmatmul.mubr.msk.f32.gmra.mxu0 %vm1003_vm2, %v964_v1  ;;  %v429_v50 = vand.u32 3, %v428_v13  ;;  %v3283_v32 = vpop.permute.xlu0 %1195 }
 0x15f   :  { %1092 = vmatprep.mubr.f32.mxu0 %v2232_v49  ;;  %v1211_v28 = vmul.f32 %v3283_v32, %v2311_v16 }
 0x160   :  { %vm434_vm5 = vcmp.eq.s32.totalorder %v429_v50, 2  ;;  %vm431_vm6 = vcmp.eq.s32.totalorder %v429_v50, 0  ;;  %vm430_vm7 = vcmp.lt.s32.totalorder %v429_v50, 2 }
 0x161   :  { %1792 = vperm.xlu1 %2148, %v1292_v39  }
 0x162   :  { %2066 = vmatmul.mubr.msk.f32.gmra.mxu0 %vm1003_vm2, %v965_v30 }
 0x163   :  { %1098 = vmatprep.mubr.f32.mxu0 %v2232_v49 }
 0x165   :  { %1788 = vperm.xlu1 %2148, %v1291_v7  }
 0x166   :  { %2067 = vmatmul.mubr.msk.f32.gmra.mxu0 %vm1003_vm2, %v966_v26 }
 0x167   :  { %1378 = vmatprep.mubr.f32.mxu0 %v2232_v49  ;;  %v2181_v37 = vpop.eup %2180 }
 0x168   :  { %v2183_v3 = vpop.eup %2182  ;;  %v435_v43 = vxor.u32 2147483648, %v2181_v37 }
 0x169   :  { %v432_v61 = vxor.u32 2147483648, %v2183_v3  ;;  %2150 = vset.pattern.permute.xlu1 %v3564_v63 }
 0x16a   :  { %v436_v4 = vsel %vm434_vm5, %v435_v43, %v2183_v3  ;;  %2072 = vmatmul.mubr.msk.f32.vlgmr.msra.gmra.mxu0 %vm1003_vm2, %v1298_v58 }
 0x16b   :  { %v433_v46 = vsel %vm431_vm6, %v2181_v37, %v432_v61  ;;  %1384 = vmatprep.mubr.f32.mxu0 %v2232_v49 }
 0x16c   :  { %v437_v8 = vsel %vm430_vm7, %v433_v46, %v436_v4  ;;  %v1210_v4 = vmul.f32 %v3283_v32, %v2309_v15 }
 0x16d   :  { %v438_v59 = vsel %vm427_vm8, nan, %v437_v8 }
 0x16e   :  { %1136 = vmatpush1.msra.mxu1 %v438_v59 }
 0x16f   :  { %2068 = vmatmul.mubr.msk.f32.vlgmr.msra.gmra.mxu1 %vm1003_vm2, %v963_v41  ;;  %1431 = vmatprep.subr.mxu1 %v2727_v38  ;;  %v1299_v38 = vld [vmem:[%s3532_s5 + $0x8] sm:$0xff] }
 0x170   :  { %1432 = vmatpush1.msra.mxu1 %v2985_v22  ;;  %1175 = vmatprep.mubr.f32.mxu1 %v2232_v49  ;;  %v1300_v22 = vld [vmem:[%s3532_s5 + $0x10] sm:$0xff] }
 0x171   :  { %1433 = vmatprep.subr.mxu1 %v3142_v36  ;;  %2073 = vmatmul.mubr.msk.f32.gmra.mxu0 %vm1003_vm2, %v1299_v38  ;;  %v1301_v36 = vld [vmem:[%s3532_s5 + $0x18] sm:$0xff] }
 0x172   :  { %1434 = vmatpush1.msra.mxu1 %v438_v59  ;;  %1390 = vmatprep.mubr.f32.mxu0 %v2232_v49 }
 0x173   :  { %2069 = vmatmul.mubr.msk.f32.gmra.mxu1 %vm1003_vm2, %v964_v1  ;;  %v1223_v1 = vmul.f32 %v3259_v54, %v2311_v16 }
 0x174   :  { %1181 = vmatprep.mubr.f32.mxu1 %v2232_v49 }
 0x175   :  { %2074 = vmatmul.mubr.msk.f32.gmra.mxu0 %vm1003_vm2, %v1300_v22  ;;  %v3247_v5 = vpop.permute.xlu1 %979 }
 0x176   :  { %1396 = vmatprep.mubr.f32.mxu0 %v2232_v49  ;;  %v996_v24 = vmul.f32 %v3247_v5, %v2335_v34  ;;  %v995_v29 = vmul.f32 %v3247_v5, %v2333_v33 }
 0x177   :  { %2070 = vmatmul.mubr.msk.f32.gmra.mxu1 %vm1003_vm2, %v965_v30 }
 0x178   :  { %1187 = vmatprep.mubr.f32.mxu1 %v2232_v49 }
 0x179   :  { %2075 = vmatmul.mubr.msk.f32.gmra.mxu0 %vm1003_vm2, %v1301_v36  ;;  %v3249_v47 = vpop.permute.xlu1 %974 }
 0x17a   :  { %1569 = vmatprep.mubr.f32.mxu0 %v2232_v49  ;;  %v992_v57 = vmul.f32 %v3249_v47, %v2335_v34  ;;  %v991_v12 = vmul.f32 %v3249_v47, %v2333_v33 }
 0x17b   :  { %2071 = vmatmul.mubr.msk.f32.gmra.mxu1 %vm1003_vm2, %v966_v26 }
 0x17c   :  { %1467 = vmatprep.mubr.f32.mxu1 %v2232_v49 }
 0x17f   :  { %2076 = vmatmul.mubr.msk.f32.vlgmr.msra.gmra.mxu1 %vm1003_vm2, %v1298_v58 }
 0x180   :  { %1473 = vmatprep.mubr.f32.mxu1 %v2232_v49 }
 0x183   :  { %2077 = vmatmul.mubr.msk.f32.gmra.mxu1 %vm1003_vm2, %v1299_v38  ;;  %v3251_v60 = vpop.permute.xlu1 %1203 }
 0x184   :  { %1479 = vmatprep.mubr.f32.mxu1 %v2232_v49  ;;  %v1219_v56 = vmul.f32 %v3251_v60, %v2311_v16  ;;  %v1218_v13 = vmul.f32 %v3251_v60, %v2309_v15 }
 0x187   :  { %2078 = vmatmul.mubr.msk.f32.gmra.mxu1 %vm1003_vm2, %v1300_v22  ;;  %v3255_v10 = vpop.permute.xlu1 %1199 }
 0x188   :  { %1485 = vmatprep.mubr.f32.mxu1 %v2232_v49  ;;  %v1215_v2 = vmul.f32 %v3255_v10, %v2311_v16  ;;  %v1214_v52 = vmul.f32 %v3255_v10, %v2309_v15 }
 0x18b   :  { %2079 = vmatmul.mubr.msk.f32.gmra.mxu1 %vm1003_vm2, %v1301_v36 }
 0x18c   :  { %1658 = vmatprep.mubr.f32.mxu1 %v2232_v49 }
 0x1af   :  { %v3261_v51 = vpop.permute.xlu1 %1255 }
 0x1b3   :  { %v3285_v35 = vpop.permute.xlu1 %1251 }
 0x1b7   :  { %v3300_v36 = vpop.permute.xlu1 %1247 }
 0x21a   :  { %v1082_v0 = vpop.f32.mrf.mxu0 }
 0x21b   :  { %v1083_v61 = vadd.f32 %v1082_v0, %v987_v27  ;;  %v3305_v0 = vpop.permute.xlu0 %1243 }
 0x21c   :  { %v1084_v11 = vpop.f32.mrf.mxu0 }
 0x21d   :  { %v1085_v50 = vadd.f32 %v1084_v11, %v988_v62  ;;  %v1226_v39 = vadd.f32 %v1210_v4, %v1083_v61  ;;  %v1221_v4 = vmul.f32 %v3251_v60, %v2315_v18 }
 0x21e   :  { %v1088_v20 = vpop.f32.mrf.mxu0 }
 0x21f   :  { %v1089_v30 = vadd.f32 %v1088_v20, %v991_v12  ;;  %v1227_v22 = vadd.f32 %v1211_v28, %v1085_v50  ;;  %v997_v28 = vmul.f32 %v3247_v5, %v2299_v9  ;;  %v1224_v50 = vmul.f32 %v3259_v54, %v2313_v17 }
 0x220   :  { %v1090_v45 = vpop.f32.mrf.mxu0 }
 0x221   :  { %v1091_v19 = vadd.f32 %v1090_v45, %v992_v57  ;;  %v1230_v58 = vadd.f32 %v1214_v52, %v1089_v30  ;;  %v1259_v62 = vadd.f32 %v3305_v0, %v1227_v22  ;;  %v994_v52 = vmul.f32 %v3249_v47, %v2337_v42 }
 0x222   :  { %v1094_v63 = vpop.f32.mrf.mxu0 }
 0x223   :  { %v1095_v14 = vadd.f32 %v1094_v63, %v995_v29  ;;  %v1231_v8 = vadd.f32 %v1215_v2, %v1091_v19  ;;  %v1262_v45 = vadd.f32 %v3300_v36, %v1230_v58  ;;  %v1258_v29 = vadd.f32 %v3305_v0, %v1226_v39 }
 0x224   :  { %v1096_v40 = vpop.f32.mrf.mxu0  ;;  %v1275_v12 = vmax.f32 %v1259_v62, 0.0  ;;  %v998_v19 = vmul.f32 %v3247_v5, %v2337_v42  ;;  %v1002_v5 = vmul.f32 %v3253_v48, %v2337_v42  ;;  %v1216_v58 = vmul.f32 %v3255_v10, %v2313_v17 }
 0x225   :  { %v1097_v25 = vadd.f32 %v1096_v40, %v996_v24  ;;  %v1234_v46 = vadd.f32 %v1218_v13, %v1095_v14  ;;  %v1263_v20 = vadd.f32 %v3300_v36, %v1231_v8  ;;  %v1274_v2 = vmax.f32 %v1258_v29, 0.0  ;;  %v3314_v14 = vld [vmem:[%s3531_s4] sm:$0xff] }
 0x226   :  { %v1100_v41 = vpop.f32.mrf.mxu0  ;;  %v1225_v8 = vmul.f32 %v3259_v54, %v2315_v18 }
 0x227   :  { %v1101_v44 = vadd.f32 %v1100_v41, %v999_v23  ;;  %v1235_v37 = vadd.f32 %v1219_v56, %v1097_v25  ;;  %v1266_v7 = vadd.f32 %v3285_v35, %v1234_v46  ;;  %v1279_v25 = vmax.f32 %v1263_v20, 0.0  ;;  %v3324_v56 = vld [vmem:[%s3531_s4 + $0x8] sm:$0xff] }
 0x228   :  { %v1102_v26 = vpop.f32.mrf.mxu0  ;;  %v1278_v23 = vmax.f32 %v1262_v45, 0.0 }
 0x229   :  { %v1238_v3 = vadd.f32 %v1222_v53, %v1101_v44  ;;  %v1103_v43 = vadd.f32 %v1102_v26, %v1000_v21  ;;  %v1267_v6 = vadd.f32 %v3285_v35, %v1235_v37  ;;  %v1282_v40 = vmax.f32 %v1266_v7, 0.0 }
 0x22a   :  { %v989_v44 = vmul.f32 %v3257_v31, %v2299_v9  ;;  %v1001_v26 = vmul.f32 %v3253_v48, %v2299_v9  ;;  %v993_v37 = vmul.f32 %v3249_v47, %v2299_v9  ;;  %v1296_v47 = vld [vmem:[%s3531_s4 + $0x10] sm:$0xff]  ;;  %v1213_v48 = vmul.f32 %v3283_v32, %v2315_v18 }
 0x22b   :  { %v1239_v59 = vadd.f32 %v1223_v1, %v1103_v43  ;;  %v1270_v38 = vadd.f32 %v3261_v51, %v1238_v3  ;;  %v1283_v27 = vmax.f32 %v1267_v6, 0.0  ;;  %v990_v1 = vmul.f32 %v3257_v31, %v2337_v42 }
 0x22c   :  { %v1217_v31 = vmul.f32 %v3255_v10, %v2315_v18 }
 0x22d   :  { %v1271_v55 = vadd.f32 %v3261_v51, %v1239_v59  ;;  %v1286_v63 = vmax.f32 %v1270_v38, 0.0  ;;  %v1220_v38 = vmul.f32 %v3251_v60, %v2313_v17  ;;  %v1297_v60 = vld [vmem:[%s3531_s4 + $0x18] sm:$0xff] }
 0x22f   :  { %v1287_v11 = vmax.f32 %v1271_v55, 0.0  ;;  %v1171_v24 = vpop.f32.mrf.mxu1 }
 0x230   :  { %v1172_v7 = vadd.f32 %v1171_v24, %v989_v44 }
 0x231   :  { %1529 = vmatprep.subr.mxu0 %v1287_v11  ;;  %v1173_v57 = vpop.f32.mrf.mxu1  ;;  %v1212_v11 = vmul.f32 %v3283_v32, %v2313_v17 }
 0x232   :  { %1530 = vmatpush1.msra.mxu0 %v1286_v63  ;;  %v1174_v55 = vadd.f32 %v1173_v57, %v990_v1 }
 0x233   :  { %1531 = vmatprep.subr.mxu0 %v1283_v27  ;;  %v1177_v53 = vpop.f32.mrf.mxu1  ;;  %v1228_v32 = vadd.f32 %v1212_v11, %v1172_v7 }
 0x234   :  { %1532 = vmatpush1.msra.mxu0 %v1282_v40  ;;  %v1178_v59 = vadd.f32 %v1177_v53, %v993_v37  ;;  %v1229_v62 = vadd.f32 %v1213_v48, %v1174_v55 }
 0x235   :  { %1533 = vmatprep.subr.mxu0 %v1279_v25  ;;  %v1179_v41 = vpop.f32.mrf.mxu1 }
 0x236   :  { %1534 = vmatpush1.msra.mxu0 %v1278_v23  ;;  %v1180_v61 = vadd.f32 %v1179_v41, %v994_v52  ;;  %v1232_v10 = vadd.f32 %v1216_v58, %v1178_v59 }
 0x237   :  { %1535 = vmatprep.subr.mxu0 %v1275_v12  ;;  %v1183_v21 = vpop.f32.mrf.mxu1 }
 0x238   :  { %1536 = vmatpush1.msra.mxu0 %v1274_v2  ;;  %v1184_v3 = vadd.f32 %v1183_v21, %v997_v28  ;;  %v1233_v45 = vadd.f32 %v1217_v31, %v1180_v61  ;;  %v1264_v23 = vadd.f32 %v3300_v36, %v1232_v10  ;;  %v1261_v2 = vadd.f32 %v3305_v0, %v1229_v62  ;;  %v3390_v28 = vpop.permute.xlu1 %1700  ;;  %v3404_v61 = vpop.permute.xlu0 %1685 }
 0x239   :  { %2080 = vmatmul.mubr.msk.f32.vlgmr.msra.gmra.mxu0 %vm1492_vm9, %v3314_v14  ;;  %v1185_v30 = vpop.f32.mrf.mxu1 }
 0x23a   :  { %1575 = vmatprep.mubr.f32.mxu0 %v2232_v49  ;;  %v1186_v13 = vadd.f32 %v1185_v30, %v998_v19  ;;  %v1236_v20 = vadd.f32 %v1220_v38, %v1184_v3  ;;  %v1265_v25 = vadd.f32 %v3300_v36, %v1233_v45  ;;  %v1280_v21 = vmax.f32 %v1264_v23, 0.0  ;;  %v1832_v36 = vld [vmem:[%s3535_s8] sm:$0x7] }
 0x23b   :  { %v1189_v43 = vpop.f32.mrf.mxu1  ;;  %v1277_v19 = vmax.f32 %v1261_v2, 0.0  ;;  %1835 = vperm.xlu1 %2150, %v1832_v36   ;;  %v1716_v36 = vmul.f32 %v3390_v28, %v2335_v34 }
 0x23c   :  { %v1190_v46 = vadd.f32 %v1189_v43, %v1001_v26  ;;  %v1237_v6 = vadd.f32 %v1221_v4, %v1186_v13  ;;  %v1268_v40 = vadd.f32 %v3285_v35, %v1236_v20  ;;  %v3392_v30 = vpop.permute.xlu1 %1695  ;;  %v3410_v59 = vpop.permute.xlu0 %1748 }
 0x23d   :  { %2081 = vmatmul.mubr.msk.f32.gmra.mxu0 %vm1492_vm9, %v3324_v56  ;;  %v1191_v22 = vpop.f32.mrf.mxu1  ;;  %v1711_v62 = vmul.f32 %v3392_v30, %v2333_v33 }
 0x23e   :  { %1581 = vmatprep.mubr.f32.mxu0 %v2232_v49  ;;  %v1240_v54 = vadd.f32 %v1224_v50, %v1190_v46  ;;  %v1192_v39 = vadd.f32 %v1191_v22, %v1002_v5  ;;  %v1269_v29 = vadd.f32 %v3285_v35, %v1237_v6  ;;  %v1284_v41 = vmax.f32 %v1268_v40, 0.0 }
 0x23f   :  { %v1281_v35 = vmax.f32 %v1265_v25, 0.0  ;;  %v3396_v50 = vpop.f32.mrf.mxu1  ;;  %v1763_v6 = vmul.f32 %v3410_v59, %v2309_v15  ;;  %v1715_v25 = vmul.f32 %v3390_v28, %v2333_v33 }
 0x240   :  { %v1241_v63 = vadd.f32 %v1225_v8, %v1192_v39  ;;  %v1272_v27 = vadd.f32 %v3261_v51, %v1240_v54  ;;  %v1285_v12 = vmax.f32 %v1269_v29, 0.0  ;;  %v3394_v26 = vpop.permute.xlu1 %1690  ;;  %v1764_v54 = vmul.f32 %v3410_v59, %v2311_v16 }
 0x241   :  { %2082 = vmatmul.mubr.msk.f32.gmra.mxu0 %vm1492_vm9, %v1296_v47  ;;  %v3398_v37 = vpop.f32.mrf.mxu1 }
 0x242   :  { %1587 = vmatprep.mubr.f32.mxu0 %v2232_v49  ;;  %v1273_v24 = vadd.f32 %v3261_v51, %v1241_v63  ;;  %v1288_v53 = vmax.f32 %v1272_v27, 0.0  ;;  %v1260_v51 = vadd.f32 %v3305_v0, %v1228_v32  ;;  %v1380_v0 = vpop.f32.mrf.mxu0  ;;  %v1712_v63 = vmul.f32 %v3392_v30, %v2335_v34 }
 0x243   :  { %v3402_v5 = vpop.f32.mrf.mxu1  ;;  %v1708_v27 = vmul.f32 %v3394_v26, %v2335_v34 }
 0x244   :  { %v1289_v57 = vmax.f32 %v1273_v24, 0.0  ;;  %v1276_v44 = vmax.f32 %v1260_v51, 0.0  ;;  %v3400_v31 = vpop.permute.xlu1 %1744 }
 0x245   :  { %2083 = vmatmul.mubr.msk.f32.gmra.mxu0 %vm1492_vm9, %v1297_v60  ;;  %v1760_v55 = vmul.f32 %v3400_v31, %v2311_v16 }
 0x246   :  { %1905 = vmatprep.mubr.f32.mxu0 %v2232_v49  ;;  %1618 = vmatprep.subr.mxu1 %v1289_v57 }
 0x247   :  { %1619 = vmatpush1.msra.mxu1 %v1288_v53  ;;  %v1703_v53 = vmul.f32 %v3404_v61, %v2333_v33 }
 0x248   :  { %1620 = vmatprep.subr.mxu1 %v1285_v12  ;;  %v3406_v46 = vpop.permute.xlu1 %1740  ;;  %v1707_v12 = vmul.f32 %v3394_v26, %v2333_v33 }
 0x249   :  { %1621 = vmatpush1.msra.mxu1 %v1284_v41  ;;  %v1756_v11 = vmul.f32 %v3406_v46, %v2311_v16  ;;  %v3440_v41 = vpop.permute.xlu0 %1736 }
 0x24a   :  { %1622 = vmatprep.subr.mxu1 %v1281_v35  ;;  %v1752_v33 = vmul.f32 %v3440_v41, %v2311_v16 }
 0x24b   :  { %1623 = vmatpush1.msra.mxu1 %v1280_v21 }
 0x24c   :  { %1624 = vmatprep.subr.mxu1 %v1277_v19  ;;  %v3414_v22 = vpop.permute.xlu1 %1796 }
 0x24d   :  { %1625 = vmatpush1.msra.mxu1 %v1276_v44 }
 0x24e   :  { %2084 = vmatmul.mubr.msk.f32.vlgmr.msra.gmra.mxu1 %vm1492_vm9, %v3314_v14  ;;  %v1382_v14 = vpop.f32.mrf.mxu0 }
 0x24f   :  { %1664 = vmatprep.mubr.f32.mxu1 %v2232_v49 }
 0x250   :  { %v1386_v1 = vpop.f32.mrf.mxu0  ;;  %v3442_v35 = vpop.permute.xlu1 %1792 }
 0x252   :  { %2085 = vmatmul.mubr.msk.f32.gmra.mxu1 %vm1492_vm9, %v3324_v56  ;;  %v1388_v56 = vpop.f32.mrf.mxu0 }
 0x253   :  { %1670 = vmatprep.mubr.f32.mxu1 %v2232_v49 }
 0x254   :  { %v1392_v52 = vpop.f32.mrf.mxu0  ;;  %v3457_v16 = vpop.permute.xlu1 %1788 }
 0x256   :  { %2086 = vmatmul.mubr.msk.f32.gmra.mxu1 %vm1492_vm9, %v1296_v47  ;;  %v1394_v13 = vpop.f32.mrf.mxu0  ;;  %v3408_v47 = vpop.f32.mrf.mxu1 }
 0x257   :  { %1676 = vmatprep.mubr.f32.mxu1 %v2232_v49 }
 0x258   :  { %v3412_v38 = vpop.f32.mrf.mxu1 }
 0x25a   :  { %2087 = vmatmul.mubr.msk.f32.gmra.mxu1 %vm1492_vm9, %v1297_v60  ;;  %v1704_v60 = vmul.f32 %v3404_v61, %v2335_v34  ;;  %v3432_v29 = vpop.f32.mrf.mxu1  ;;  %v1751_v34 = vmul.f32 %v3440_v41, %v2309_v15 }
 0x25b   :  { %1976 = vmatprep.mubr.f32.mxu1 %v2232_v49  ;;  %v1398_v49 = vpop.f32.mrf.mxu0 }
 0x25d   :  { %v1400_v3 = vpop.f32.mrf.mxu0 }
 0x2f9   :  { %v1571_v43 = vpop.f32.mrf.mxu0 }
 0x2fa   :  { %v1572_v23 = vadd.f32 %v1571_v43, %v1380_v0  ;;  %v1759_v0 = vmul.f32 %v3400_v31, %v2309_v15 }
 0x2fb   :  { %v1573_v4 = vpop.f32.mrf.mxu0 }
 0x2fc   :  { %v1574_v32 = vadd.f32 %v1573_v4, %v1382_v14  ;;  %v1755_v14 = vmul.f32 %v3406_v46, %v2309_v15 }
 0x2fd   :  { %v1577_v8 = vpop.f32.mrf.mxu0 }
 0x2fe   :  { %v1578_v10 = vadd.f32 %v1577_v8, %v1386_v1 }
 0x2ff   :  { %v1579_v48 = vpop.f32.mrf.mxu0 }
 0x300   :  { %v1580_v20 = vadd.f32 %v1579_v48, %v1388_v56  ;;  %v1723_v1 = vadd.f32 %v1707_v12, %v1578_v10  ;;  %v3452_v56 = vpop.f32.mrf.mxu1  ;;  %v3462_v10 = vpop.permute.xlu0 %1784 }
 0x301   :  { %v1583_v58 = vpop.f32.mrf.mxu0 }
 0x302   :  { %v1584_v39 = vadd.f32 %v1583_v58, %v1392_v52  ;;  %v1724_v21 = vadd.f32 %v1708_v27, %v1580_v20  ;;  %v1720_v52 = vadd.f32 %v1704_v60, %v1574_v32  ;;  %v1771_v58 = vadd.f32 %v1755_v14, %v1723_v1 }
 0x303   :  { %v1585_v7 = vpop.f32.mrf.mxu0  ;;  %v1758_v1 = vmul.f32 %v3406_v46, %v2315_v18 }
 0x304   :  { %v1586_v45 = vadd.f32 %v1585_v7, %v1394_v13  ;;  %v1727_v2 = vadd.f32 %v1711_v62, %v1584_v39  ;;  %v1772_v8 = vadd.f32 %v1756_v11, %v1724_v21  ;;  %v1489_v7 = vpop.f32.mrf.mxu1  ;;  %v1768_v20 = vadd.f32 %v1752_v33, %v1720_v52  ;;  %v3471_v21 = vld [vmem:[%s3534_s7] sm:$0x7]  ;;  %s2234_s7 = smov [#allocation2]  }
 0x305   :  { %v1589_v24 = vpop.f32.mrf.mxu0  ;;  %v1803_v11 = vadd.f32 %v3457_v16, %v1771_v58  ;;  %v1709_v58 = vmul.f32 %v3394_v26, %v2299_v9  ;;  %s2023_s12 = sshll.u32 %s2234_s7, 4  ;;  %s2024_s12 = int_to_ptr.vmem [resolvable:$true] %s2023_s12 }
 0x306   :  { %v1728_v40 = vadd.f32 %v1712_v63, %v1586_v45  ;;  %v1590_v57 = vadd.f32 %v1589_v24, %v1398_v49  ;;  %v1775_v4 = vadd.f32 %v1759_v0, %v1727_v2  ;;  %v1800_v24 = vadd.f32 %v3462_v10, %v1768_v20  ;;  %s2202_s2 = scalar_lea.vmem %s2024_s12, 256  ;;  %p2207_p1 = scmp.lt.s32.totalorder %s2024_s12, %s2024_s12 }
 0x307   :  { %v1591_v51 = vpop.f32.mrf.mxu0  ;;  %v1766_v0 = vmul.f32 %v3410_v59, %v2315_v18  ;;  %p2203_p0 = scmp.ne.s32.totalorder %s2024_s12, %s2202_s2  ;;  %p2208_p2 = scmp.lt.s32.totalorder %s2202_s2, %s2202_s2 }
 0x308   :  { %v1731_v19 = vadd.f32 %v1715_v25, %v1590_v57  ;;  %v1592_v44 = vadd.f32 %v1591_v51, %v1400_v3  ;;  %v1776_v13 = vadd.f32 %v1760_v55, %v1728_v40  ;;  %v1719_v3 = vadd.f32 %v1703_v53, %v1572_v23 }
 0x309   :  { %v1807_v63 = vadd.f32 %v3442_v35, %v1775_v4  ;;  %v1819_v53 = vmax.f32 %v1803_v11, 0.0  ;;  %v1816_v2 = vmax.f32 %v1800_v24, 0.0  ;;  %p2209_p3 = por %p2208_p2, %p2207_p1 }
 0x30a   :  { %v1779_v49 = vadd.f32 %v1763_v6, %v1731_v19  ;;  %v1732_v43 = vadd.f32 %v1716_v36, %v1592_v44  ;;  %v1808_v55 = vadd.f32 %v3442_v35, %v1776_v13  ;;  %v1767_v6 = vadd.f32 %v1751_v34, %v1719_v3 }
 0x30b   :  { %v1823_v57 = vmax.f32 %v1807_v63, 0.0  ;;  %v1762_v44 = vmul.f32 %v3400_v31, %v2315_v18  ;;  %v1765_v36 = vmul.f32 %v3410_v59, %v2313_v17  ;;  %v1713_v3 = vmul.f32 %v3392_v30, %v2299_v9  ;;  %p2210_p4 = pnand %p2209_p3, %p2203_p0 }
 0x30c   :  { %v1780_v48 = vadd.f32 %v1764_v54, %v1732_v43  ;;  %v1811_v39 = vadd.f32 %v3414_v22, %v1779_v49  ;;  %v1804_v54 = vadd.f32 %v3457_v16, %v1772_v8  ;;  %v1824_v32 = vmax.f32 %v1808_v55, 0.0 }
 0x30d   :  { %v1799_v40 = vadd.f32 %v3462_v10, %v1767_v6  ;;  %v1714_v49 = vmul.f32 %v3392_v30, %v2337_v42  ;;  %v1706_v43 = vmul.f32 %v3404_v61, %v2337_v42  ;;  %v1717_v8 = vmul.f32 %v3390_v28, %v2299_v9 }
 0x30e   :  { %v1812_v45 = vadd.f32 %v3414_v22, %v1780_v48  ;;  %v1660_v60 = vpop.f32.mrf.mxu1  ;;  %v1827_v27 = vmax.f32 %v1811_v39, 0.0  ;;  %v1820_v23 = vmax.f32 %v1804_v54, 0.0 }
 0x30f   :  { %v1815_v51 = vmax.f32 %v1799_v40, 0.0  ;;  %v1661_v48 = vadd.f32 %v1660_v60, %v3396_v50  ;;  %v1757_v50 = vmul.f32 %v3406_v46, %v2313_v17 }
 0x310   :  { %v1828_v15 = vmax.f32 %v1812_v45, 0.0  ;;  %v1662_v62 = vpop.f32.mrf.mxu1 }
 0x311   :  { %v1663_v4 = vadd.f32 %v1662_v62, %v3398_v37  ;;  %v1718_v37 = vmul.f32 %v3390_v28, %v2337_v42 }
 0x312   :  { %1865 = vmatprep.subr.mxu0 %v1828_v15  ;;  %v1666_v25 = vpop.f32.mrf.mxu1 }
 0x313   :  { %1866 = vmatpush1.msra.mxu0 %v1827_v27  ;;  %v1667_v59 = vadd.f32 %v1666_v25, %v3402_v5  ;;  %v1705_v5 = vmul.f32 %v3404_v61, %v2299_v9  ;;  %v1754_v61 = vmul.f32 %v3440_v41, %v2315_v18  ;;  %v1722_v63 = vadd.f32 %v1706_v43, %v1663_v4 }
 0x314   :  { %1867 = vmatprep.subr.mxu0 %v1824_v32  ;;  %v1668_v12 = vpop.f32.mrf.mxu1 }
 0x315   :  { %1868 = vmatpush1.msra.mxu0 %v1823_v57  ;;  %v1669_v52 = vadd.f32 %v1668_v12, %v3408_v47  ;;  %v1725_v6 = vadd.f32 %v1709_v58, %v1667_v59  ;;  %v1721_v15 = vadd.f32 %v1705_v5, %v1661_v48  ;;  %v1770_v27 = vadd.f32 %v1754_v61, %v1722_v63 }
 0x316   :  { %1869 = vmatprep.subr.mxu0 %v1820_v23  ;;  %v1672_v19 = vpop.f32.mrf.mxu1 }
 0x317   :  { %1870 = vmatpush1.msra.mxu0 %v1819_v53  ;;  %v1673_v14 = vadd.f32 %v1672_v19, %v3412_v38  ;;  %v1710_v38 = vmul.f32 %v3394_v26, %v2337_v42  ;;  %v1773_v11 = vadd.f32 %v1757_v50, %v1725_v6 }
 0x318   :  { %1871 = vmatprep.subr.mxu0 %v1816_v2  ;;  %v1674_v33 = vpop.f32.mrf.mxu1 }
 0x319   :  { %1872 = vmatpush1.msra.mxu0 %v1815_v51  ;;  %v1675_v13 = vadd.f32 %v1674_v33, %v3432_v29  ;;  %v1729_v39 = vadd.f32 %v1713_v3, %v1673_v14  ;;  %v1726_v30 = vadd.f32 %v1710_v38, %v1669_v52  ;;  %v1805_v57 = vadd.f32 %v3457_v16, %v1773_v11 }
 0x31a   :  { %2088 = vmatmul.mubr.msk.f32.vlgmr.msra.gmra.mxu0 %vm1492_vm9, %v3471_v21  ;;  %v1678_v34 = vpop.f32.mrf.mxu1 }
 0x31b   :  { %v1730_v47 = vadd.f32 %v1714_v49, %v1675_v13  ;;  %v1679_v29 = vadd.f32 %v1678_v34, %v3452_v56  ;;  %v1761_v56 = vmul.f32 %v3400_v31, %v2313_v17  ;;  %v1774_v42 = vadd.f32 %v1758_v1, %v1726_v30 }
 0x31c   :  { %v1680_v20 = vpop.f32.mrf.mxu1  ;;  %v1821_v12 = vmax.f32 %v1805_v57, 0.0 }
 0x31d   :  { %v1733_v45 = vadd.f32 %v1717_v8, %v1679_v29  ;;  %v1681_v55 = vadd.f32 %v1680_v20, %v1489_v7  ;;  %v1778_v9 = vadd.f32 %v1762_v44, %v1730_v47  ;;  %v1753_v7 = vmul.f32 %v3440_v41, %v2313_v17 }
 0x31e   :  { %v1777_v54 = vadd.f32 %v1761_v56, %v1729_v39  ;;  %v1806_v40 = vadd.f32 %v3457_v16, %v1774_v42  ;;  %v1802_v41 = vadd.f32 %v3462_v10, %v1770_v27  ;;  %v1836_v16 = vpop.permute.xlu1 %1835 }
 0x31f   :  { %v1781_v26 = vadd.f32 %v1765_v36, %v1733_v45  ;;  %v1734_v60 = vadd.f32 %v1718_v37, %v1681_v55  ;;  %v1810_v18 = vadd.f32 %v3442_v35, %v1778_v9  ;;  %v1769_v62 = vadd.f32 %v1753_v7, %v1721_v15 }
 0x320   :  { %v1809_v24 = vadd.f32 %v3442_v35, %v1777_v54  ;;  %v1818_v35 = vmax.f32 %v1802_v41, 0.0 }
 0x321   :  { %v1782_v28 = vadd.f32 %v1766_v0, %v1734_v60  ;;  %v1813_v31 = vadd.f32 %v3414_v22, %v1781_v26  ;;  %v1826_v25 = vmax.f32 %v1810_v18, 0.0  ;;  %v1801_v23 = vadd.f32 %v3462_v10, %v1769_v62 }
 0x322   :  { %v1825_v53 = vmax.f32 %v1809_v24, 0.0 }
 0x323   :  { %v1814_v46 = vadd.f32 %v3414_v22, %v1782_v28  ;;  %v1829_v17 = vmax.f32 %v1813_v31, 0.0  ;;  %v1822_v22 = vmax.f32 %v1806_v40, 0.0  ;;  %v1817_v2 = vmax.f32 %v1801_v23, 0.0 }
 0x325   :  { %v1830_v32 = vmax.f32 %v1814_v46, 0.0 }
 0x327   :  { %1936 = vmatprep.subr.mxu1 %v1830_v32 }
 0x328   :  { %1937 = vmatpush1.msra.mxu1 %v1829_v17 }
 0x329   :  { %1938 = vmatprep.subr.mxu1 %v1826_v25 }
 0x32a   :  { %1939 = vmatpush1.msra.mxu1 %v1825_v53 }
 0x32b   :  { %1940 = vmatprep.subr.mxu1 %v1822_v22 }
 0x32c   :  { %1941 = vmatpush1.msra.mxu1 %v1821_v12 }
 0x32d   :  { %1942 = vmatprep.subr.mxu1 %v1818_v35 }
 0x32e   :  { %1943 = vmatpush1.msra.mxu1 %v1817_v2 }
 0x32f   :  { %2089 = vmatmul.mubr.msk.f32.vlgmr.msra.gmra.mxu1 %vm1492_vm9, %v3471_v21 }
 0x3da   :  { %v1907_v51 = vpop.f32.mrf.mxu0 }
 0x3db   :  { %v1908_v19 = vadd.f32 %v1907_v51, %v1836_v16 }
 0x3dc   :  { %v1909_v44 = vpop.f32.mrf.mxu0 }
 0x3dd   :  { %v2090_v10 = vmul.f32 -1.442695, %v1908_v19  ;;  %v1910_v36 = vadd.f32 %v1909_v44, %v1836_v16 }
 0x3df   :  { %2184 = vpow2.f32 %v2090_v10  ;;  %v2091_v0 = vmul.f32 -1.442695, %v1910_v36 }
 0x3e1   :  { %2186 = vpow2.f32 %v2091_v0 }
 0x3ec   :  { %v2185_v14 = vpop.eup %2184 }
 0x3ed   :  { %v1995_v33 = vadd.f32 1.0, %v2185_v14 }
 0x3ee   :  { %v2187_v1 = vpop.eup %2186 }
 0x3ef   :  { %v1996_v52 = vadd.f32 1.0, %v2187_v1  ;;  %2188 = vrcp.f32 %v1995_v33  ;;  %v1978_v13 = vpop.f32.mrf.mxu1 }
 0x3f0   :  { %v1979_v49 = vadd.f32 %v1978_v13, %v1836_v16 }
 0x3f1   :  { %2190 = vrcp.f32 %v1996_v52  ;;  %v1980_v43 = vpop.f32.mrf.mxu1 }
 0x3f2   :  { %v2092_v59 = vmul.f32 -1.442695, %v1979_v49  ;;  %v1981_v21 = vadd.f32 %v1980_v43, %v1836_v16 }
 0x3f4   :  { %2192 = vpow2.f32 %v2092_v59  ;;  %v2093_v38 = vmul.f32 -1.442695, %v1981_v21 }
 0x3f6   :  { %2194 = vpow2.f32 %v2093_v38 }
 0x3fc   :  { %v2189_v3 = vpop.eup %2188 }
 0x3fe   :  { %v2191_v34 = vpop.eup %2190 }
 0x3ff   :  { %v2011_v4 = vcombine.low %v2189_v3, %v2191_v34 }
 0x401   :  { %2015 = vst [vmem:[#allocation2] sm:$0x77] %v2011_v4  ;;  %v2193_v47 = vpop.eup %2192 }
 0x402   :  { %v1997_v29 = vadd.f32 1.0, %v2193_v47 }
 0x403   :  { %v2195_v8 = vpop.eup %2194 }
 0x404   :  { %v1998_v48 = vadd.f32 1.0, %v2195_v8  ;;  %2196 = vrcp.f32 %v1997_v29 }
 0x406   :  { %2198 = vrcp.f32 %v1998_v48 }
 0x411   :  { %v2197_v5 = vpop.eup %2196 }
 0x413   :  { %v2199_v58 = vpop.eup %2198 }
 0x414   :  { %v2012_v39 = vcombine.low %v2197_v5, %v2199_v58 }
 0x416   :  { %2016 = vst [vmem:[#allocation2 + $0x8] sm:$0x77] %v2012_v39 }
 0x417   :  { %2213 = shalt.err (!%p2210_p4)
}
 0x418   :  { %2026 = dma.vmem_to_hbm [thread:$0]  %s2024_s12, 256, %s3536_s9, [#allocation3]  }
 0x419   :  { %2222 = dma.done.wait [#allocation3], 256  }
 0x41a   :  { %2223 = vsyncadd [#allocation3], 4294967040 }
 0x41b   :  { %2030 = vsyncpa [#allocation3], 1 }

</bundles_post_ra>
